<compile_context>
chip_gen: v7x
topology: tpu7x:2x2x1
jax: 0.10.0
libtpu: 0.0.40
codegen_flags: <defaults>
</compile_context>

<pallas_src>
import functools

import jax
import jax.numpy as jnp
from jax.experimental import pallas as pl
from jax.experimental.pallas import tpu as pltpu


_MAX_SPATIAL_TILE = 4096  # lanes per grid tile (multiple of 512)


def _spatial_tile(hw, batch):
    ts = hw if hw <= _MAX_SPATIAL_TILE else _MAX_SPATIAL_TILE
    # v7x has two TensorCores: for single-image calls make sure there are
    # >= 2 parallel grid steps so both cores get work.
    if batch == 1 and ts == hw and hw % 256 == 0:
        ts = hw // 2
    return ts


def _lane_chunk(ts, preferred):
    # Largest in-kernel lane chunk (multiple of 128) dividing the tile.
    for c in (preferred, 512, 256, 128):
        if c <= ts and ts % c == 0:
            return c
    return ts


# --------------------------------------------------------------------------
# Kernel 1: fused stem (1x1 conv 3 -> C + ReLU) + 4x4 average pool (P4 level)
# --------------------------------------------------------------------------
def _stem_pool_kernel(x_ref, w_ref, b_ref, o_ref, *, channels, chunk):
    """x_ref : (1, Cin, 16, TS) bf16 -- the 16 input pixels feeding each pooled
               output position sit on sublanes, pooled positions on lanes.
    w_ref : (C, Cin) f32 in SMEM, b_ref : (C,) f32 in SMEM.
    o_ref : (1, C, TS) bf16 pooled P4 feature tile."""
    cin = x_ref.shape[1]
    ts = x_ref.shape[3]
    nchunks = ts // chunk
    inv = jnp.float32(1.0 / 16.0)
    group = 16  # bf16 sublane tile height -> unmasked full-tile stores

    for ci in range(nchunks):                    # static offsets: aligned slices
        lo, hi = ci * chunk, (ci + 1) * chunk
        # Hoisted bf16->f32 casts; the Cin planes stay resident across channels.
        planes = [x_ref[0, k, :, lo:hi].astype(jnp.float32) for k in range(cin)]
        for g0 in range(0, channels, group):
            g1 = min(g0 + group, channels)
            rows = []
            for c in range(g0, g1):
                # Cin scalar-broadcast VPU FMAs (stem conv), bias, ReLU ...
                f = planes[0] * w_ref[c, 0]
                for k in range(1, cin):
                    f = f + planes[k] * w_ref[c, k]
                f = jnp.maximum(f + b_ref[c], 0.0)
                # ... 4x4 average pool == mean over the 16 sublane positions.
                rows.append(jnp.sum(f, axis=0, keepdims=True) * inv)
            blk = jnp.concatenate(rows, axis=0)              # (group, chunk) f32
            o_ref[0, g0:g1, lo:hi] = blk.astype(o_ref.dtype)  # full-tile store


def stem_pool(x_grouped, stem_w, stem_b, *, channels):
    n, cin, npool, hw = x_grouped.shape
    ts = _spatial_tile(hw, n)
    chunk = _lane_chunk(ts, 512)
    grid = (n, pl.cdiv(hw, ts))
    return pl.pallas_call(
        functools.partial(_stem_pool_kernel, channels=channels, chunk=chunk),
        out_shape=jax.ShapeDtypeStruct((n, channels, hw), jnp.bfloat16),
        grid=grid,
        in_specs=[
            pl.BlockSpec((1, cin, npool, ts), lambda b, i: (b, 0, 0, i)),
            pl.BlockSpec(memory_space=pltpu.MemorySpace.SMEM),
            pl.BlockSpec(memory_space=pltpu.MemorySpace.SMEM),
        ],
        out_specs=pl.BlockSpec((1, channels, ts), lambda b, i: (b, 0, i)),
        compiler_params=pltpu.CompilerParams(
            dimension_semantics=("parallel", "parallel"),
            vmem_limit_bytes=32 * 1024 * 1024),
    )(x_grouped, stem_w, stem_b)


# --------------------------------------------------------------------------
# Kernel 2: fused hm + box regression heads, block-diagonally stacked
# --------------------------------------------------------------------------
def _heads_kernel(x_ref, wblk_ref, bblk_ref, wout_ref, bout_ref,
                  hm_ref, bx_ref, *, depth, chunk):
    """x_ref    : (1, C, TS) bf16 P4 feature tile.
    wblk_ref : (depth, 2C, 2C) bf16 block-diag(hm_blk, box_blk) weights.
    bblk_ref : (depth, 2C, 1) f32 stacked block biases.
    wout_ref : (8, 2C) bf16 fused output conv (row 0 -> hm, rows 1:5 -> box).
    bout_ref : (8, 1) f32 fused output bias.
    hm_ref   : (1, 1, TS) f32, bx_ref : (1, 4, TS) f32."""
    ts = x_ref.shape[2]
    nchunks = ts // chunk
    w_list = [wblk_ref[d] for d in range(depth)]           # (2C, 2C) bf16 each
    wout = wout_ref[...]                                   # (8, 2C) bf16
    bout = bout_ref[...].astype(jnp.float32)               # (8, 1)

    for ci in range(nchunks):
        lo, hi = ci * chunk, (ci + 1) * chunk
        xc = x_ref[0, :, lo:hi].astype(jnp.float32)        # (C, chunk)
        h = jnp.concatenate([xc, xc], axis=0)              # (2C, chunk) = xh|xb
        # TODO(synk): SENextBottleneck2d definition not provided; stand-in is a
        # residual (1x1 conv + bias + ReLU) block of identical channel count.
        for d in range(depth):
            y = jnp.dot(w_list[d], h.astype(jnp.bfloat16),
                        preferred_element_type=jnp.float32)
            y = y + bblk_ref[d].astype(jnp.float32)
            h = h + jnp.maximum(y, 0.0)
        o = jnp.dot(wout, h.astype(jnp.bfloat16),
                    preferred_element_type=jnp.float32) + bout   # (8, chunk)
        hm_ref[0, :, lo:hi] = jax.nn.sigmoid(o[0:1, :]).astype(hm_ref.dtype)
        bx_ref[0, :, lo:hi] = o[1:5, :].astype(bx_ref.dtype)


def reg_heads(feat, wblk, bblk, wout, bout, *, depth):
    n, c, hw = feat.shape
    ts = _spatial_tile(hw, n)
    chunk = _lane_chunk(ts, 256)
    grid = (n, pl.cdiv(hw, ts))

    def resident(arr):
        # Weights stay resident in VMEM: constant block index => copied once.
        nd = arr.ndim
        return pl.BlockSpec(arr.shape, lambda b, i, _nd=nd: (0,) * _nd)

    return pl.pallas_call(
        functools.partial(_heads_kernel, depth=depth, chunk=chunk),
        out_shape=(jax.ShapeDtypeStruct((n, 1, hw), jnp.float32),
                   jax.ShapeDtypeStruct((n, 4, hw), jnp.float32)),
        grid=grid,
        in_specs=[
            pl.BlockSpec((1, c, ts), lambda b, i: (b, 0, i)),
            resident(wblk), resident(bblk), resident(wout), resident(bout),
        ],
        out_specs=(pl.BlockSpec((1, 1, ts), lambda b, i: (b, 0, i)),
                   pl.BlockSpec((1, 4, ts), lambda b, i: (b, 0, i))),
        compiler_params=pltpu.CompilerParams(
            dimension_semantics=("parallel", "parallel"),
            vmem_limit_bytes=32 * 1024 * 1024),
    )(feat, wblk, bblk, wout, bout)


# --------------------------------------------------------------------------
# Plain-JAX glue (layout plumbing, anchors)
# --------------------------------------------------------------------------
def empty_anchors(h, w):
    # TODO(synk): EmptyAnchors definition not provided; emit the conventional
    # normalized (cx, cy, 0, 0) grid BoxMap of shape (4, h, w).
    ys = (jnp.arange(h, dtype=jnp.float32) + 0.5) / h
    xs = (jnp.arange(w, dtype=jnp.float32) + 0.5) / w
    yg, xg = jnp.meshgrid(ys, xs, indexing="ij")
    return jnp.stack([xg, yg, jnp.zeros_like(xg), jnp.zeros_like(yg)], axis=0)


class CenterNetPallas:
    """CenterNet(channels, backbone, depth=2, out_idx=4) forward pass."""

    def __init__(self, key, *, channels=32, depth=2, out_idx=4, in_channels=3):
        self.out_idx = out_idx - 3          # == 1 -> the P4 pyramid level
        self.channels = channels
        self.depth = depth
        keys = jax.random.split(key, 5)
        s = 0.05
        c = channels
        # Backbone stem projection (1x1 conv in_channels -> channels); scalars
        # live in SMEM and are applied as VPU broadcast-FMAs in the kernel.
        self.stem_w = s * jax.random.normal(keys[0], (c, in_channels), jnp.float32)
        self.stem_b = jnp.zeros((c,), jnp.float32)
        # hm_reg = Reg(channels -> 1, depth) + Sigmoid   (weights bf16 for MXU)
        self.hm_wblk = (s * jax.random.normal(keys[1], (depth, c, c))).astype(jnp.bfloat16)
        self.hm_bblk = jnp.zeros((depth, c, 1), jnp.float32)
        self.hm_wout = (s * jax.random.normal(keys[2], (1, c))).astype(jnp.bfloat16)
        self.hm_bout = jnp.zeros((1, 1), jnp.float32)
        # box_reg = Reg(channels -> 4, depth)
        self.box_wblk = (s * jax.random.normal(keys[3], (depth, c, c))).astype(jnp.bfloat16)
        self.box_bblk = jnp.zeros((depth, c, 1), jnp.float32)
        self.box_wout = (s * jax.random.normal(keys[4], (4, c))).astype(jnp.bfloat16)
        self.box_bout = jnp.zeros((4, 1), jnp.float32)

        # Pre-stacked block-diagonal head weights (built once at init): the two
        # independent residual stacks run as one (2C, 2C) matmul chain and both
        # 1x1 output convs as a single (8, 2C) matmul (rows padded 5 -> 8).
        wblk = jnp.zeros((depth, 2 * c, 2 * c), jnp.bfloat16)
        wblk = wblk.at[:, :c, :c].set(self.hm_wblk)
        wblk = wblk.at[:, c:, c:].set(self.box_wblk)
        self.head_wblk = wblk
        self.head_bblk = jnp.concatenate([self.hm_bblk, self.box_bblk], axis=1)
        wout = jnp.zeros((8, 2 * c), jnp.bfloat16)
        wout = wout.at[0:1, :c].set(self.hm_wout)
        wout = wout.at[1:5, c:].set(self.box_wout)
        self.head_wout = wout
        bout = jnp.zeros((8, 1), jnp.float32)
        bout = bout.at[0:1].set(self.hm_bout)
        bout = bout.at[1:5].set(self.box_bout)
        self.head_bout = bout

    # -- backbone + fpn ------------------------------------------------------
    def backbone(self, x_nchw):
        # TODO(synk): real backbone and BiFPN definitions not provided; the
        # stand-in is a 1x1-conv stem + ReLU followed by a 4x4 average pool,
        # producing only the P4 level actually consumed (fpn == identity,
        # out_idx=4 -> fp[1]); P3/P5 are never needed and are not materialized.
        n, cin, height, width = x_nchw.shape
        h, w = height // 4, width // 4
        # Regroup so the 16 input pixels of each pooled output position sit on
        # sublanes and output positions on lanes.  The input is cast to bf16
        # first so this one-off XLA regroup pass (and the kernel's read) only
        # moves half the bytes; accumulation stays f32 inside the kernel.
        # TODO(synk): fold the regroup into the kernel via strided DMA to
        # remove this extra HBM pass of the input entirely.
        xb = x_nchw.astype(jnp.bfloat16)
        xg = xb.reshape(n, cin, h, 4, w, 4)
        xg = jnp.transpose(xg, (0, 1, 3, 5, 2, 4)).reshape(n, cin, 16, h * w)
        feat = stem_pool(xg, self.stem_w, self.stem_b, channels=self.channels)
        return feat, (h, w)                 # (N, C, h*w) bf16, spatial on lanes

    # -- forward -------------------------------------------------------------
    def __call__(self, x_nchw):
        feat, (h, w) = self.backbone(x_nchw)     # == fp[self.out_idx] (P4)
        n = feat.shape[0]
        hm, bm = reg_heads(feat, self.head_wblk, self.head_bblk,
                           self.head_wout, self.head_bout, depth=self.depth)
        heatmaps = hm.reshape(n, 1, h, w)        # already NCHW: free reshape
        boxmaps = bm.reshape(n, 4, h, w)
        anchors = empty_anchors(h, w)            # (4, h, w)
        return heatmaps, boxmaps, anchors


# --------------------------------------------------------------------------
# Pure-JAX reference (mirrors the kernels' arithmetic) for a correctness check
# --------------------------------------------------------------------------
def _ref_forward(model, x_nchw):
    hp = jax.lax.Precision.HIGHEST
    n, cin, height, width = x_nchw.shape
    h, w = height // 4, width // 4
    hw = h * w
    xg = x_nchw.astype(jnp.bfloat16).reshape(n, cin, h, 4, w, 4)
    xg = jnp.transpose(xg, (0, 1, 3, 5, 2, 4)).reshape(n, cin, 16, hw)
    xg = xg.astype(jnp.float32)
    f = jnp.einsum("ok,nkps->nops", model.stem_w, xg, precision=hp)
    f = f + model.stem_b[None, :, None, None]
    f = jnp.maximum(f, 0.0).mean(axis=2)                       # (N, C, hw)
    f = f.astype(jnp.bfloat16).astype(jnp.float32)

    def reg(z, wb, bb, wo, bo, depth):
        for d in range(depth):
            y = jnp.einsum("oc,ncs->nos", wb[d].astype(jnp.float32),
                           z.astype(jnp.bfloat16).astype(jnp.float32),
                           precision=hp) + bb[d][None]
            z = z + jnp.maximum(y, 0.0)
        return jnp.einsum("oc,ncs->nos", wo.astype(jnp.float32),
                          z.astype(jnp.bfloat16).astype(jnp.float32),
                          precision=hp) + bo[None]

    hm = jax.nn.sigmoid(reg(f, model.hm_wblk, model.hm_bblk,
                            model.hm_wout, model.hm_bout, model.depth))
    bm = reg(f, model.box_wblk, model.box_bblk,
             model.box_wout, model.box_bout, model.depth)
    return hm.reshape(n, 1, h, w), bm.reshape(n, 4, h, w)


if __name__ == "__main__":
    key = jax.random.PRNGKey(0)
    k_params, k_input = jax.random.split(key)

    model = CenterNetPallas(k_params, channels=32, depth=2, out_idx=4, in_channels=3)

    # Small image batch, NCHW like the PyTorch module expects.
    x = jax.random.normal(k_input, (2, 3, 16, 16), jnp.float32)

    heatmaps, boxmaps, anchors = model(x)
    jax.block_until_ready((heatmaps, boxmaps, anchors))

    assert heatmaps.shape == (2, 1, 4, 4)
    assert boxmaps.shape == (2, 4, 4, 4)
    assert anchors.shape == (4, 4, 4)
    assert bool(jnp.all((heatmaps >= 0.0) & (heatmaps <= 1.0)))

    hm_ref, bm_ref = _ref_forward(model, x)
    assert bool(jnp.allclose(heatmaps, hm_ref, atol=5e-3, rtol=5e-3))
    assert bool(jnp.allclose(boxmaps, bm_ref, atol=5e-3, rtol=5e-3))

    print("KERNEL_OK")
</pallas_src>

<mosaic_0001>
module attributes {stable_mosaic.version = 11 : i64} {
  func.func @_stem_pool_kernel(%arg0: i32, %arg1: i32, %arg2: memref<1x3x16x16xbf16, #tpu.memory_space<vmem>>, %arg3: memref<32x3xf32, #tpu.memory_space<smem>>, %arg4: memref<32xf32, #tpu.memory_space<smem>>, %arg5: memref<1x32x16xbf16, #tpu.memory_space<vmem>>) attributes {dimension_semantics = [#tpu.dimension_semantics<parallel>, #tpu.dimension_semantics<parallel>], iteration_bounds = array<i64: 2, 1>, scalar_prefetch = 0 : i64, scratch_operands = 0 : i64, tpu.core_type = #tpu.core_type<tc>, window_params = [{transform_indices = @transform_0, window_bounds = array<i64: 1, 3, 16, 16>}, {transform_indices = @transform_1, window_bounds = array<i64: 32, 3>}, {transform_indices = @transform_2, window_bounds = array<i64: 32>}, {transform_indices = @transform_3, window_bounds = array<i64: 1, 32, 16>}]} {
    %c0 = arith.constant 0 : index
    %c0_0 = arith.constant 0 : index
    %c0_1 = arith.constant 0 : index
    %c0_2 = arith.constant 0 : index
    %0 = vector.load %arg2[%c0, %c0_0, %c0_1, %c0_2] : memref<1x3x16x16xbf16, #tpu.memory_space<vmem>>, vector<1x1x16x16xbf16>
    %1 = vector.shape_cast %0 : vector<1x1x16x16xbf16> to vector<16x16xbf16>
    %2 = arith.extf %1 : vector<16x16xbf16> to vector<16x16xf32>
    %c0_3 = arith.constant 0 : index
    %c1 = arith.constant 1 : index
    %c0_4 = arith.constant 0 : index
    %c0_5 = arith.constant 0 : index
    %3 = vector.load %arg2[%c0_3, %c1, %c0_4, %c0_5] : memref<1x3x16x16xbf16, #tpu.memory_space<vmem>>, vector<1x1x16x16xbf16>
    %4 = vector.shape_cast %3 : vector<1x1x16x16xbf16> to vector<16x16xbf16>
    %5 = arith.extf %4 : vector<16x16xbf16> to vector<16x16xf32>
    %c0_6 = arith.constant 0 : index
    %c2 = arith.constant 2 : index
    %c0_7 = arith.constant 0 : index
    %c0_8 = arith.constant 0 : index
    %6 = vector.load %arg2[%c0_6, %c2, %c0_7, %c0_8] : memref<1x3x16x16xbf16, #tpu.memory_space<vmem>>, vector<1x1x16x16xbf16>
    %7 = vector.shape_cast %6 : vector<1x1x16x16xbf16> to vector<16x16xbf16>
    %8 = arith.extf %7 : vector<16x16xbf16> to vector<16x16xf32>
    %c0_9 = arith.constant 0 : index
    %c0_10 = arith.constant 0 : index
    %9 = memref.load %arg3[%c0_9, %c0_10] : memref<32x3xf32, #tpu.memory_space<smem>>
    %10 = vector.broadcast %9 : f32 to vector<16x16xf32>
    %11 = arith.mulf %2, %10 : vector<16x16xf32>
    %c0_11 = arith.constant 0 : index
    %c1_12 = arith.constant 1 : index
    %12 = memref.load %arg3[%c0_11, %c1_12] : memref<32x3xf32, #tpu.memory_space<smem>>
    %13 = vector.broadcast %12 : f32 to vector<16x16xf32>
    %14 = arith.mulf %5, %13 : vector<16x16xf32>
    %15 = arith.addf %11, %14 : vector<16x16xf32>
    %c0_13 = arith.constant 0 : index
    %c2_14 = arith.constant 2 : index
    %16 = memref.load %arg3[%c0_13, %c2_14] : memref<32x3xf32, #tpu.memory_space<smem>>
    %17 = vector.broadcast %16 : f32 to vector<16x16xf32>
    %18 = arith.mulf %8, %17 : vector<16x16xf32>
    %19 = arith.addf %15, %18 : vector<16x16xf32>
    %c0_15 = arith.constant 0 : index
    %20 = memref.load %arg4[%c0_15] : memref<32xf32, #tpu.memory_space<smem>>
    %21 = vector.broadcast %20 : f32 to vector<16x16xf32>
    %22 = arith.addf %19, %21 : vector<16x16xf32>
    %cst = arith.constant 0.000000e+00 : f32
    %23 = vector.broadcast %cst : f32 to vector<16x16xf32>
    %24 = arith.maximumf %22, %23 : vector<16x16xf32>
    %cst_16 = arith.constant dense<0.000000e+00> : vector<16xf32>
    %25 = vector.multi_reduction <add>, %24, %cst_16 [0] : vector<16x16xf32> to vector<16xf32>
    %26 = vector.shape_cast %25 : vector<16xf32> to vector<1x16xf32>
    %cst_17 = arith.constant 6.250000e-02 : f32
    %27 = vector.broadcast %cst_17 : f32 to vector<1x16xf32>
    %28 = arith.mulf %26, %27 : vector<1x16xf32>
    %c1_18 = arith.constant 1 : index
    %c0_19 = arith.constant 0 : index
    %29 = memref.load %arg3[%c1_18, %c0_19] : memref<32x3xf32, #tpu.memory_space<smem>>
    %30 = vector.broadcast %29 : f32 to vector<16x16xf32>
    %31 = arith.mulf %2, %30 : vector<16x16xf32>
    %c1_20 = arith.constant 1 : index
    %c1_21 = arith.constant 1 : index
    %32 = memref.load %arg3[%c1_20, %c1_21] : memref<32x3xf32, #tpu.memory_space<smem>>
    %33 = vector.broadcast %32 : f32 to vector<16x16xf32>
    %34 = arith.mulf %5, %33 : vector<16x16xf32>
    %35 = arith.addf %31, %34 : vector<16x16xf32>
    %c1_22 = arith.constant 1 : index
    %c2_23 = arith.constant 2 : index
    %36 = memref.load %arg3[%c1_22, %c2_23] : memref<32x3xf32, #tpu.memory_space<smem>>
    %37 = vector.broadcast %36 : f32 to vector<16x16xf32>
    %38 = arith.mulf %8, %37 : vector<16x16xf32>
    %39 = arith.addf %35, %38 : vector<16x16xf32>
    %c1_24 = arith.constant 1 : index
    %40 = memref.load %arg4[%c1_24] : memref<32xf32, #tpu.memory_space<smem>>
    %41 = vector.broadcast %40 : f32 to vector<16x16xf32>
    %42 = arith.addf %39, %41 : vector<16x16xf32>
    %cst_25 = arith.constant 0.000000e+00 : f32
    %43 = vector.broadcast %cst_25 : f32 to vector<16x16xf32>
    %44 = arith.maximumf %42, %43 : vector<16x16xf32>
    %cst_26 = arith.constant dense<0.000000e+00> : vector<16xf32>
    %45 = vector.multi_reduction <add>, %44, %cst_26 [0] : vector<16x16xf32> to vector<16xf32>
    %46 = vector.shape_cast %45 : vector<16xf32> to vector<1x16xf32>
    %cst_27 = arith.constant 6.250000e-02 : f32
    %47 = vector.broadcast %cst_27 : f32 to vector<1x16xf32>
    %48 = arith.mulf %46, %47 : vector<1x16xf32>
    %c2_28 = arith.constant 2 : index
    %c0_29 = arith.constant 0 : index
    %49 = memref.load %arg3[%c2_28, %c0_29] : memref<32x3xf32, #tpu.memory_space<smem>>
    %50 = vector.broadcast %49 : f32 to vector<16x16xf32>
    %51 = arith.mulf %2, %50 : vector<16x16xf32>
    %c2_30 = arith.constant 2 : index
    %c1_31 = arith.constant 1 : index
    %52 = memref.load %arg3[%c2_30, %c1_31] : memref<32x3xf32, #tpu.memory_space<smem>>
    %53 = vector.broadcast %52 : f32 to vector<16x16xf32>
    %54 = arith.mulf %5, %53 : vector<16x16xf32>
    %55 = arith.addf %51, %54 : vector<16x16xf32>
    %c2_32 = arith.constant 2 : index
    %c2_33 = arith.constant 2 : index
    %56 = memref.load %arg3[%c2_32, %c2_33] : memref<32x3xf32, #tpu.memory_space<smem>>
    %57 = vector.broadcast %56 : f32 to vector<16x16xf32>
    %58 = arith.mulf %8, %57 : vector<16x16xf32>
    %59 = arith.addf %55, %58 : vector<16x16xf32>
    %c2_34 = arith.constant 2 : index
    %60 = memref.load %arg4[%c2_34] : memref<32xf32, #tpu.memory_space<smem>>
    %61 = vector.broadcast %60 : f32 to vector<16x16xf32>
    %62 = arith.addf %59, %61 : vector<16x16xf32>
    %cst_35 = arith.constant 0.000000e+00 : f32
    %63 = vector.broadcast %cst_35 : f32 to vector<16x16xf32>
    %64 = arith.maximumf %62, %63 : vector<16x16xf32>
    %cst_36 = arith.constant dense<0.000000e+00> : vector<16xf32>
    %65 = vector.multi_reduction <add>, %64, %cst_36 [0] : vector<16x16xf32> to vector<16xf32>
    %66 = vector.shape_cast %65 : vector<16xf32> to vector<1x16xf32>
    %cst_37 = arith.constant 6.250000e-02 : f32
    %67 = vector.broadcast %cst_37 : f32 to vector<1x16xf32>
    %68 = arith.mulf %66, %67 : vector<1x16xf32>
    %c3 = arith.constant 3 : index
    %c0_38 = arith.constant 0 : index
    %69 = memref.load %arg3[%c3, %c0_38] : memref<32x3xf32, #tpu.memory_space<smem>>
    %70 = vector.broadcast %69 : f32 to vector<16x16xf32>
    %71 = arith.mulf %2, %70 : vector<16x16xf32>
    %c3_39 = arith.constant 3 : index
    %c1_40 = arith.constant 1 : index
    %72 = memref.load %arg3[%c3_39, %c1_40] : memref<32x3xf32, #tpu.memory_space<smem>>
    %73 = vector.broadcast %72 : f32 to vector<16x16xf32>
    %74 = arith.mulf %5, %73 : vector<16x16xf32>
    %75 = arith.addf %71, %74 : vector<16x16xf32>
    %c3_41 = arith.constant 3 : index
    %c2_42 = arith.constant 2 : index
    %76 = memref.load %arg3[%c3_41, %c2_42] : memref<32x3xf32, #tpu.memory_space<smem>>
    %77 = vector.broadcast %76 : f32 to vector<16x16xf32>
    %78 = arith.mulf %8, %77 : vector<16x16xf32>
    %79 = arith.addf %75, %78 : vector<16x16xf32>
    %c3_43 = arith.constant 3 : index
    %80 = memref.load %arg4[%c3_43] : memref<32xf32, #tpu.memory_space<smem>>
    %81 = vector.broadcast %80 : f32 to vector<16x16xf32>
    %82 = arith.addf %79, %81 : vector<16x16xf32>
    %cst_44 = arith.constant 0.000000e+00 : f32
    %83 = vector.broadcast %cst_44 : f32 to vector<16x16xf32>
    %84 = arith.maximumf %82, %83 : vector<16x16xf32>
    %cst_45 = arith.constant dense<0.000000e+00> : vector<16xf32>
    %85 = vector.multi_reduction <add>, %84, %cst_45 [0] : vector<16x16xf32> to vector<16xf32>
    %86 = vector.shape_cast %85 : vector<16xf32> to vector<1x16xf32>
    %cst_46 = arith.constant 6.250000e-02 : f32
    %87 = vector.broadcast %cst_46 : f32 to vector<1x16xf32>
    %88 = arith.mulf %86, %87 : vector<1x16xf32>
    %c4 = arith.constant 4 : index
    %c0_47 = arith.constant 0 : index
    %89 = memref.load %arg3[%c4, %c0_47] : memref<32x3xf32, #tpu.memory_space<smem>>
    %90 = vector.broadcast %89 : f32 to vector<16x16xf32>
    %91 = arith.mulf %2, %90 : vector<16x16xf32>
    %c4_48 = arith.constant 4 : index
    %c1_49 = arith.constant 1 : index
    %92 = memref.load %arg3[%c4_48, %c1_49] : memref<32x3xf32, #tpu.memory_space<smem>>
    %93 = vector.broadcast %92 : f32 to vector<16x16xf32>
    %94 = arith.mulf %5, %93 : vector<16x16xf32>
    %95 = arith.addf %91, %94 : vector<16x16xf32>
    %c4_50 = arith.constant 4 : index
    %c2_51 = arith.constant 2 : index
    %96 = memref.load %arg3[%c4_50, %c2_51] : memref<32x3xf32, #tpu.memory_space<smem>>
    %97 = vector.broadcast %96 : f32 to vector<16x16xf32>
    %98 = arith.mulf %8, %97 : vector<16x16xf32>
    %99 = arith.addf %95, %98 : vector<16x16xf32>
    %c4_52 = arith.constant 4 : index
    %100 = memref.load %arg4[%c4_52] : memref<32xf32, #tpu.memory_space<smem>>
    %101 = vector.broadcast %100 : f32 to vector<16x16xf32>
    %102 = arith.addf %99, %101 : vector<16x16xf32>
    %cst_53 = arith.constant 0.000000e+00 : f32
    %103 = vector.broadcast %cst_53 : f32 to vector<16x16xf32>
    %104 = arith.maximumf %102, %103 : vector<16x16xf32>
    %cst_54 = arith.constant dense<0.000000e+00> : vector<16xf32>
    %105 = vector.multi_reduction <add>, %104, %cst_54 [0] : vector<16x16xf32> to vector<16xf32>
    %106 = vector.shape_cast %105 : vector<16xf32> to vector<1x16xf32>
    %cst_55 = arith.constant 6.250000e-02 : f32
    %107 = vector.broadcast %cst_55 : f32 to vector<1x16xf32>
    %108 = arith.mulf %106, %107 : vector<1x16xf32>
    %c5 = arith.constant 5 : index
    %c0_56 = arith.constant 0 : index
    %109 = memref.load %arg3[%c5, %c0_56] : memref<32x3xf32, #tpu.memory_space<smem>>
    %110 = vector.broadcast %109 : f32 to vector<16x16xf32>
    %111 = arith.mulf %2, %110 : vector<16x16xf32>
    %c5_57 = arith.constant 5 : index
    %c1_58 = arith.constant 1 : index
    %112 = memref.load %arg3[%c5_57, %c1_58] : memref<32x3xf32, #tpu.memory_space<smem>>
    %113 = vector.broadcast %112 : f32 to vector<16x16xf32>
    %114 = arith.mulf %5, %113 : vector<16x16xf32>
    %115 = arith.addf %111, %114 : vector<16x16xf32>
    %c5_59 = arith.constant 5 : index
    %c2_60 = arith.constant 2 : index
    %116 = memref.load %arg3[%c5_59, %c2_60] : memref<32x3xf32, #tpu.memory_space<smem>>
    %117 = vector.broadcast %116 : f32 to vector<16x16xf32>
    %118 = arith.mulf %8, %117 : vector<16x16xf32>
    %119 = arith.addf %115, %118 : vector<16x16xf32>
    %c5_61 = arith.constant 5 : index
    %120 = memref.load %arg4[%c5_61] : memref<32xf32, #tpu.memory_space<smem>>
    %121 = vector.broadcast %120 : f32 to vector<16x16xf32>
    %122 = arith.addf %119, %121 : vector<16x16xf32>
    %cst_62 = arith.constant 0.000000e+00 : f32
    %123 = vector.broadcast %cst_62 : f32 to vector<16x16xf32>
    %124 = arith.maximumf %122, %123 : vector<16x16xf32>
    %cst_63 = arith.constant dense<0.000000e+00> : vector<16xf32>
    %125 = vector.multi_reduction <add>, %124, %cst_63 [0] : vector<16x16xf32> to vector<16xf32>
    %126 = vector.shape_cast %125 : vector<16xf32> to vector<1x16xf32>
    %cst_64 = arith.constant 6.250000e-02 : f32
    %127 = vector.broadcast %cst_64 : f32 to vector<1x16xf32>
    %128 = arith.mulf %126, %127 : vector<1x16xf32>
    %c6 = arith.constant 6 : index
    %c0_65 = arith.constant 0 : index
    %129 = memref.load %arg3[%c6, %c0_65] : memref<32x3xf32, #tpu.memory_space<smem>>
    %130 = vector.broadcast %129 : f32 to vector<16x16xf32>
    %131 = arith.mulf %2, %130 : vector<16x16xf32>
    %c6_66 = arith.constant 6 : index
    %c1_67 = arith.constant 1 : index
    %132 = memref.load %arg3[%c6_66, %c1_67] : memref<32x3xf32, #tpu.memory_space<smem>>
    %133 = vector.broadcast %132 : f32 to vector<16x16xf32>
    %134 = arith.mulf %5, %133 : vector<16x16xf32>
    %135 = arith.addf %131, %134 : vector<16x16xf32>
    %c6_68 = arith.constant 6 : index
    %c2_69 = arith.constant 2 : index
    %136 = memref.load %arg3[%c6_68, %c2_69] : memref<32x3xf32, #tpu.memory_space<smem>>
    %137 = vector.broadcast %136 : f32 to vector<16x16xf32>
    %138 = arith.mulf %8, %137 : vector<16x16xf32>
    %139 = arith.addf %135, %138 : vector<16x16xf32>
    %c6_70 = arith.constant 6 : index
    %140 = memref.load %arg4[%c6_70] : memref<32xf32, #tpu.memory_space<smem>>
    %141 = vector.broadcast %140 : f32 to vector<16x16xf32>
    %142 = arith.addf %139, %141 : vector<16x16xf32>
    %cst_71 = arith.constant 0.000000e+00 : f32
    %143 = vector.broadcast %cst_71 : f32 to vector<16x16xf32>
    %144 = arith.maximumf %142, %143 : vector<16x16xf32>
    %cst_72 = arith.constant dense<0.000000e+00> : vector<16xf32>
    %145 = vector.multi_reduction <add>, %144, %cst_72 [0] : vector<16x16xf32> to vector<16xf32>
    %146 = vector.shape_cast %145 : vector<16xf32> to vector<1x16xf32>
    %cst_73 = arith.constant 6.250000e-02 : f32
    %147 = vector.broadcast %cst_73 : f32 to vector<1x16xf32>
    %148 = arith.mulf %146, %147 : vector<1x16xf32>
    %c7 = arith.constant 7 : index
    %c0_74 = arith.constant 0 : index
    %149 = memref.load %arg3[%c7, %c0_74] : memref<32x3xf32, #tpu.memory_space<smem>>
    %150 = vector.broadcast %149 : f32 to vector<16x16xf32>
    %151 = arith.mulf %2, %150 : vector<16x16xf32>
    %c7_75 = arith.constant 7 : index
    %c1_76 = arith.constant 1 : index
    %152 = memref.load %arg3[%c7_75, %c1_76] : memref<32x3xf32, #tpu.memory_space<smem>>
    %153 = vector.broadcast %152 : f32 to vector<16x16xf32>
    %154 = arith.mulf %5, %153 : vector<16x16xf32>
    %155 = arith.addf %151, %154 : vector<16x16xf32>
    %c7_77 = arith.constant 7 : index
    %c2_78 = arith.constant 2 : index
    %156 = memref.load %arg3[%c7_77, %c2_78] : memref<32x3xf32, #tpu.memory_space<smem>>
    %157 = vector.broadcast %156 : f32 to vector<16x16xf32>
    %158 = arith.mulf %8, %157 : vector<16x16xf32>
    %159 = arith.addf %155, %158 : vector<16x16xf32>
    %c7_79 = arith.constant 7 : index
    %160 = memref.load %arg4[%c7_79] : memref<32xf32, #tpu.memory_space<smem>>
    %161 = vector.broadcast %160 : f32 to vector<16x16xf32>
    %162 = arith.addf %159, %161 : vector<16x16xf32>
    %cst_80 = arith.constant 0.000000e+00 : f32
    %163 = vector.broadcast %cst_80 : f32 to vector<16x16xf32>
    %164 = arith.maximumf %162, %163 : vector<16x16xf32>
    %cst_81 = arith.constant dense<0.000000e+00> : vector<16xf32>
    %165 = vector.multi_reduction <add>, %164, %cst_81 [0] : vector<16x16xf32> to vector<16xf32>
    %166 = vector.shape_cast %165 : vector<16xf32> to vector<1x16xf32>
    %cst_82 = arith.constant 6.250000e-02 : f32
    %167 = vector.broadcast %cst_82 : f32 to vector<1x16xf32>
    %168 = arith.mulf %166, %167 : vector<1x16xf32>
    %c8 = arith.constant 8 : index
    %c0_83 = arith.constant 0 : index
    %169 = memref.load %arg3[%c8, %c0_83] : memref<32x3xf32, #tpu.memory_space<smem>>
    %170 = vector.broadcast %169 : f32 to vector<16x16xf32>
    %171 = arith.mulf %2, %170 : vector<16x16xf32>
    %c8_84 = arith.constant 8 : index
    %c1_85 = arith.constant 1 : index
    %172 = memref.load %arg3[%c8_84, %c1_85] : memref<32x3xf32, #tpu.memory_space<smem>>
    %173 = vector.broadcast %172 : f32 to vector<16x16xf32>
    %174 = arith.mulf %5, %173 : vector<16x16xf32>
    %175 = arith.addf %171, %174 : vector<16x16xf32>
    %c8_86 = arith.constant 8 : index
    %c2_87 = arith.constant 2 : index
    %176 = memref.load %arg3[%c8_86, %c2_87] : memref<32x3xf32, #tpu.memory_space<smem>>
    %177 = vector.broadcast %176 : f32 to vector<16x16xf32>
    %178 = arith.mulf %8, %177 : vector<16x16xf32>
    %179 = arith.addf %175, %178 : vector<16x16xf32>
    %c8_88 = arith.constant 8 : index
    %180 = memref.load %arg4[%c8_88] : memref<32xf32, #tpu.memory_space<smem>>
    %181 = vector.broadcast %180 : f32 to vector<16x16xf32>
    %182 = arith.addf %179, %181 : vector<16x16xf32>
    %cst_89 = arith.constant 0.000000e+00 : f32
    %183 = vector.broadcast %cst_89 : f32 to vector<16x16xf32>
    %184 = arith.maximumf %182, %183 : vector<16x16xf32>
    %cst_90 = arith.constant dense<0.000000e+00> : vector<16xf32>
    %185 = vector.multi_reduction <add>, %184, %cst_90 [0] : vector<16x16xf32> to vector<16xf32>
    %186 = vector.shape_cast %185 : vector<16xf32> to vector<1x16xf32>
    %cst_91 = arith.constant 6.250000e-02 : f32
    %187 = vector.broadcast %cst_91 : f32 to vector<1x16xf32>
    %188 = arith.mulf %186, %187 : vector<1x16xf32>
    %c9 = arith.constant 9 : index
    %c0_92 = arith.constant 0 : index
    %189 = memref.load %arg3[%c9, %c0_92] : memref<32x3xf32, #tpu.memory_space<smem>>
    %190 = vector.broadcast %189 : f32 to vector<16x16xf32>
    %191 = arith.mulf %2, %190 : vector<16x16xf32>
    %c9_93 = arith.constant 9 : index
    %c1_94 = arith.constant 1 : index
    %192 = memref.load %arg3[%c9_93, %c1_94] : memref<32x3xf32, #tpu.memory_space<smem>>
    %193 = vector.broadcast %192 : f32 to vector<16x16xf32>
    %194 = arith.mulf %5, %193 : vector<16x16xf32>
    %195 = arith.addf %191, %194 : vector<16x16xf32>
    %c9_95 = arith.constant 9 : index
    %c2_96 = arith.constant 2 : index
    %196 = memref.load %arg3[%c9_95, %c2_96] : memref<32x3xf32, #tpu.memory_space<smem>>
    %197 = vector.broadcast %196 : f32 to vector<16x16xf32>
    %198 = arith.mulf %8, %197 : vector<16x16xf32>
    %199 = arith.addf %195, %198 : vector<16x16xf32>
    %c9_97 = arith.constant 9 : index
    %200 = memref.load %arg4[%c9_97] : memref<32xf32, #tpu.memory_space<smem>>
    %201 = vector.broadcast %200 : f32 to vector<16x16xf32>
    %202 = arith.addf %199, %201 : vector<16x16xf32>
    %cst_98 = arith.constant 0.000000e+00 : f32
    %203 = vector.broadcast %cst_98 : f32 to vector<16x16xf32>
    %204 = arith.maximumf %202, %203 : vector<16x16xf32>
    %cst_99 = arith.constant dense<0.000000e+00> : vector<16xf32>
    %205 = vector.multi_reduction <add>, %204, %cst_99 [0] : vector<16x16xf32> to vector<16xf32>
    %206 = vector.shape_cast %205 : vector<16xf32> to vector<1x16xf32>
    %cst_100 = arith.constant 6.250000e-02 : f32
    %207 = vector.broadcast %cst_100 : f32 to vector<1x16xf32>
    %208 = arith.mulf %206, %207 : vector<1x16xf32>
    %c10 = arith.constant 10 : index
    %c0_101 = arith.constant 0 : index
    %209 = memref.load %arg3[%c10, %c0_101] : memref<32x3xf32, #tpu.memory_space<smem>>
    %210 = vector.broadcast %209 : f32 to vector<16x16xf32>
    %211 = arith.mulf %2, %210 : vector<16x16xf32>
    %c10_102 = arith.constant 10 : index
    %c1_103 = arith.constant 1 : index
    %212 = memref.load %arg3[%c10_102, %c1_103] : memref<32x3xf32, #tpu.memory_space<smem>>
    %213 = vector.broadcast %212 : f32 to vector<16x16xf32>
    %214 = arith.mulf %5, %213 : vector<16x16xf32>
    %215 = arith.addf %211, %214 : vector<16x16xf32>
    %c10_104 = arith.constant 10 : index
    %c2_105 = arith.constant 2 : index
    %216 = memref.load %arg3[%c10_104, %c2_105] : memref<32x3xf32, #tpu.memory_space<smem>>
    %217 = vector.broadcast %216 : f32 to vector<16x16xf32>
    %218 = arith.mulf %8, %217 : vector<16x16xf32>
    %219 = arith.addf %215, %218 : vector<16x16xf32>
    %c10_106 = arith.constant 10 : index
    %220 = memref.load %arg4[%c10_106] : memref<32xf32, #tpu.memory_space<smem>>
    %221 = vector.broadcast %220 : f32 to vector<16x16xf32>
    %222 = arith.addf %219, %221 : vector<16x16xf32>
    %cst_107 = arith.constant 0.000000e+00 : f32
    %223 = vector.broadcast %cst_107 : f32 to vector<16x16xf32>
    %224 = arith.maximumf %222, %223 : vector<16x16xf32>
    %cst_108 = arith.constant dense<0.000000e+00> : vector<16xf32>
    %225 = vector.multi_reduction <add>, %224, %cst_108 [0] : vector<16x16xf32> to vector<16xf32>
    %226 = vector.shape_cast %225 : vector<16xf32> to vector<1x16xf32>
    %cst_109 = arith.constant 6.250000e-02 : f32
    %227 = vector.broadcast %cst_109 : f32 to vector<1x16xf32>
    %228 = arith.mulf %226, %227 : vector<1x16xf32>
    %c11 = arith.constant 11 : index
    %c0_110 = arith.constant 0 : index
    %229 = memref.load %arg3[%c11, %c0_110] : memref<32x3xf32, #tpu.memory_space<smem>>
    %230 = vector.broadcast %229 : f32 to vector<16x16xf32>
    %231 = arith.mulf %2, %230 : vector<16x16xf32>
    %c11_111 = arith.constant 11 : index
    %c1_112 = arith.constant 1 : index
    %232 = memref.load %arg3[%c11_111, %c1_112] : memref<32x3xf32, #tpu.memory_space<smem>>
    %233 = vector.broadcast %232 : f32 to vector<16x16xf32>
    %234 = arith.mulf %5, %233 : vector<16x16xf32>
    %235 = arith.addf %231, %234 : vector<16x16xf32>
    %c11_113 = arith.constant 11 : index
    %c2_114 = arith.constant 2 : index
    %236 = memref.load %arg3[%c11_113, %c2_114] : memref<32x3xf32, #tpu.memory_space<smem>>
    %237 = vector.broadcast %236 : f32 to vector<16x16xf32>
    %238 = arith.mulf %8, %237 : vector<16x16xf32>
    %239 = arith.addf %235, %238 : vector<16x16xf32>
    %c11_115 = arith.constant 11 : index
    %240 = memref.load %arg4[%c11_115] : memref<32xf32, #tpu.memory_space<smem>>
    %241 = vector.broadcast %240 : f32 to vector<16x16xf32>
    %242 = arith.addf %239, %241 : vector<16x16xf32>
    %cst_116 = arith.constant 0.000000e+00 : f32
    %243 = vector.broadcast %cst_116 : f32 to vector<16x16xf32>
    %244 = arith.maximumf %242, %243 : vector<16x16xf32>
    %cst_117 = arith.constant dense<0.000000e+00> : vector<16xf32>
    %245 = vector.multi_reduction <add>, %244, %cst_117 [0] : vector<16x16xf32> to vector<16xf32>
    %246 = vector.shape_cast %245 : vector<16xf32> to vector<1x16xf32>
    %cst_118 = arith.constant 6.250000e-02 : f32
    %247 = vector.broadcast %cst_118 : f32 to vector<1x16xf32>
    %248 = arith.mulf %246, %247 : vector<1x16xf32>
    %c12 = arith.constant 12 : index
    %c0_119 = arith.constant 0 : index
    %249 = memref.load %arg3[%c12, %c0_119] : memref<32x3xf32, #tpu.memory_space<smem>>
    %250 = vector.broadcast %249 : f32 to vector<16x16xf32>
    %251 = arith.mulf %2, %250 : vector<16x16xf32>
    %c12_120 = arith.constant 12 : index
    %c1_121 = arith.constant 1 : index
    %252 = memref.load %arg3[%c12_120, %c1_121] : memref<32x3xf32, #tpu.memory_space<smem>>
    %253 = vector.broadcast %252 : f32 to vector<16x16xf32>
    %254 = arith.mulf %5, %253 : vector<16x16xf32>
    %255 = arith.addf %251, %254 : vector<16x16xf32>
    %c12_122 = arith.constant 12 : index
    %c2_123 = arith.constant 2 : index
    %256 = memref.load %arg3[%c12_122, %c2_123] : memref<32x3xf32, #tpu.memory_space<smem>>
    %257 = vector.broadcast %256 : f32 to vector<16x16xf32>
    %258 = arith.mulf %8, %257 : vector<16x16xf32>
    %259 = arith.addf %255, %258 : vector<16x16xf32>
    %c12_124 = arith.constant 12 : index
    %260 = memref.load %arg4[%c12_124] : memref<32xf32, #tpu.memory_space<smem>>
    %261 = vector.broadcast %260 : f32 to vector<16x16xf32>
    %262 = arith.addf %259, %261 : vector<16x16xf32>
    %cst_125 = arith.constant 0.000000e+00 : f32
    %263 = vector.broadcast %cst_125 : f32 to vector<16x16xf32>
    %264 = arith.maximumf %262, %263 : vector<16x16xf32>
    %cst_126 = arith.constant dense<0.000000e+00> : vector<16xf32>
    %265 = vector.multi_reduction <add>, %264, %cst_126 [0] : vector<16x16xf32> to vector<16xf32>
    %266 = vector.shape_cast %265 : vector<16xf32> to vector<1x16xf32>
    %cst_127 = arith.constant 6.250000e-02 : f32
    %267 = vector.broadcast %cst_127 : f32 to vector<1x16xf32>
    %268 = arith.mulf %266, %267 : vector<1x16xf32>
    %c13 = arith.constant 13 : index
    %c0_128 = arith.constant 0 : index
    %269 = memref.load %arg3[%c13, %c0_128] : memref<32x3xf32, #tpu.memory_space<smem>>
    %270 = vector.broadcast %269 : f32 to vector<16x16xf32>
    %271 = arith.mulf %2, %270 : vector<16x16xf32>
    %c13_129 = arith.constant 13 : index
    %c1_130 = arith.constant 1 : index
    %272 = memref.load %arg3[%c13_129, %c1_130] : memref<32x3xf32, #tpu.memory_space<smem>>
    %273 = vector.broadcast %272 : f32 to vector<16x16xf32>
    %274 = arith.mulf %5, %273 : vector<16x16xf32>
    %275 = arith.addf %271, %274 : vector<16x16xf32>
    %c13_131 = arith.constant 13 : index
    %c2_132 = arith.constant 2 : index
    %276 = memref.load %arg3[%c13_131, %c2_132] : memref<32x3xf32, #tpu.memory_space<smem>>
    %277 = vector.broadcast %276 : f32 to vector<16x16xf32>
    %278 = arith.mulf %8, %277 : vector<16x16xf32>
    %279 = arith.addf %275, %278 : vector<16x16xf32>
    %c13_133 = arith.constant 13 : index
    %280 = memref.load %arg4[%c13_133] : memref<32xf32, #tpu.memory_space<smem>>
    %281 = vector.broadcast %280 : f32 to vector<16x16xf32>
    %282 = arith.addf %279, %281 : vector<16x16xf32>
    %cst_134 = arith.constant 0.000000e+00 : f32
    %283 = vector.broadcast %cst_134 : f32 to vector<16x16xf32>
    %284 = arith.maximumf %282, %283 : vector<16x16xf32>
    %cst_135 = arith.constant dense<0.000000e+00> : vector<16xf32>
    %285 = vector.multi_reduction <add>, %284, %cst_135 [0] : vector<16x16xf32> to vector<16xf32>
    %286 = vector.shape_cast %285 : vector<16xf32> to vector<1x16xf32>
    %cst_136 = arith.constant 6.250000e-02 : f32
    %287 = vector.broadcast %cst_136 : f32 to vector<1x16xf32>
    %288 = arith.mulf %286, %287 : vector<1x16xf32>
    %c14 = arith.constant 14 : index
    %c0_137 = arith.constant 0 : index
    %289 = memref.load %arg3[%c14, %c0_137] : memref<32x3xf32, #tpu.memory_space<smem>>
    %290 = vector.broadcast %289 : f32 to vector<16x16xf32>
    %291 = arith.mulf %2, %290 : vector<16x16xf32>
    %c14_138 = arith.constant 14 : index
    %c1_139 = arith.constant 1 : index
    %292 = memref.load %arg3[%c14_138, %c1_139] : memref<32x3xf32, #tpu.memory_space<smem>>
    %293 = vector.broadcast %292 : f32 to vector<16x16xf32>
    %294 = arith.mulf %5, %293 : vector<16x16xf32>
    %295 = arith.addf %291, %294 : vector<16x16xf32>
    %c14_140 = arith.constant 14 : index
    %c2_141 = arith.constant 2 : index
    %296 = memref.load %arg3[%c14_140, %c2_141] : memref<32x3xf32, #tpu.memory_space<smem>>
    %297 = vector.broadcast %296 : f32 to vector<16x16xf32>
    %298 = arith.mulf %8, %297 : vector<16x16xf32>
    %299 = arith.addf %295, %298 : vector<16x16xf32>
    %c14_142 = arith.constant 14 : index
    %300 = memref.load %arg4[%c14_142] : memref<32xf32, #tpu.memory_space<smem>>
    %301 = vector.broadcast %300 : f32 to vector<16x16xf32>
    %302 = arith.addf %299, %301 : vector<16x16xf32>
    %cst_143 = arith.constant 0.000000e+00 : f32
    %303 = vector.broadcast %cst_143 : f32 to vector<16x16xf32>
    %304 = arith.maximumf %302, %303 : vector<16x16xf32>
    %cst_144 = arith.constant dense<0.000000e+00> : vector<16xf32>
    %305 = vector.multi_reduction <add>, %304, %cst_144 [0] : vector<16x16xf32> to vector<16xf32>
    %306 = vector.shape_cast %305 : vector<16xf32> to vector<1x16xf32>
    %cst_145 = arith.constant 6.250000e-02 : f32
    %307 = vector.broadcast %cst_145 : f32 to vector<1x16xf32>
    %308 = arith.mulf %306, %307 : vector<1x16xf32>
    %c15 = arith.constant 15 : index
    %c0_146 = arith.constant 0 : index
    %309 = memref.load %arg3[%c15, %c0_146] : memref<32x3xf32, #tpu.memory_space<smem>>
    %310 = vector.broadcast %309 : f32 to vector<16x16xf32>
    %311 = arith.mulf %2, %310 : vector<16x16xf32>
    %c15_147 = arith.constant 15 : index
    %c1_148 = arith.constant 1 : index
    %312 = memref.load %arg3[%c15_147, %c1_148] : memref<32x3xf32, #tpu.memory_space<smem>>
    %313 = vector.broadcast %312 : f32 to vector<16x16xf32>
    %314 = arith.mulf %5, %313 : vector<16x16xf32>
    %315 = arith.addf %311, %314 : vector<16x16xf32>
    %c15_149 = arith.constant 15 : index
    %c2_150 = arith.constant 2 : index
    %316 = memref.load %arg3[%c15_149, %c2_150] : memref<32x3xf32, #tpu.memory_space<smem>>
    %317 = vector.broadcast %316 : f32 to vector<16x16xf32>
    %318 = arith.mulf %8, %317 : vector<16x16xf32>
    %319 = arith.addf %315, %318 : vector<16x16xf32>
    %c15_151 = arith.constant 15 : index
    %320 = memref.load %arg4[%c15_151] : memref<32xf32, #tpu.memory_space<smem>>
    %321 = vector.broadcast %320 : f32 to vector<16x16xf32>
    %322 = arith.addf %319, %321 : vector<16x16xf32>
    %cst_152 = arith.constant 0.000000e+00 : f32
    %323 = vector.broadcast %cst_152 : f32 to vector<16x16xf32>
    %324 = arith.maximumf %322, %323 : vector<16x16xf32>
    %cst_153 = arith.constant dense<0.000000e+00> : vector<16xf32>
    %325 = vector.multi_reduction <add>, %324, %cst_153 [0] : vector<16x16xf32> to vector<16xf32>
    %326 = vector.shape_cast %325 : vector<16xf32> to vector<1x16xf32>
    %cst_154 = arith.constant 6.250000e-02 : f32
    %327 = vector.broadcast %cst_154 : f32 to vector<1x16xf32>
    %328 = arith.mulf %326, %327 : vector<1x16xf32>
    %329 = tpu.concatenate %28, %48, %68, %88, %108, %128, %148, %168, %188, %208, %228, %248, %268, %288, %308, %328 in 0 : vector<1x16xf32>, vector<1x16xf32>, vector<1x16xf32>, vector<1x16xf32>, vector<1x16xf32>, vector<1x16xf32>, vector<1x16xf32>, vector<1x16xf32>, vector<1x16xf32>, vector<1x16xf32>, vector<1x16xf32>, vector<1x16xf32>, vector<1x16xf32>, vector<1x16xf32>, vector<1x16xf32>, vector<1x16xf32> -> vector<16x16xf32>
    %330 = arith.truncf %329 : vector<16x16xf32> to vector<16x16xbf16>
    %c0_155 = arith.constant 0 : index
    %c0_156 = arith.constant 0 : index
    %c0_157 = arith.constant 0 : index
    %331 = vector.load %arg5[%c0_155, %c0_156, %c0_157] : memref<1x32x16xbf16, #tpu.memory_space<vmem>>, vector<1x16x16xbf16>
    %332 = vector.shape_cast %331 : vector<1x16x16xbf16> to vector<16x16xbf16>
    %333 = vector.shape_cast %330 : vector<16x16xbf16> to vector<1x16x16xbf16>
    tpu.vector_store %arg5[%c0_155, %c0_156, %c0_157], %333 {strides = array<i32>} : memref<1x32x16xbf16, #tpu.memory_space<vmem>>, vector<1x16x16xbf16>,
    %c16 = arith.constant 16 : index
    %c0_158 = arith.constant 0 : index
    %334 = memref.load %arg3[%c16, %c0_158] : memref<32x3xf32, #tpu.memory_space<smem>>
    %335 = vector.broadcast %334 : f32 to vector<16x16xf32>
    %336 = arith.mulf %2, %335 : vector<16x16xf32>
    %c16_159 = arith.constant 16 : index
    %c1_160 = arith.constant 1 : index
    %337 = memref.load %arg3[%c16_159, %c1_160] : memref<32x3xf32, #tpu.memory_space<smem>>
    %338 = vector.broadcast %337 : f32 to vector<16x16xf32>
    %339 = arith.mulf %5, %338 : vector<16x16xf32>
    %340 = arith.addf %336, %339 : vector<16x16xf32>
    %c16_161 = arith.constant 16 : index
    %c2_162 = arith.constant 2 : index
    %341 = memref.load %arg3[%c16_161, %c2_162] : memref<32x3xf32, #tpu.memory_space<smem>>
    %342 = vector.broadcast %341 : f32 to vector<16x16xf32>
    %343 = arith.mulf %8, %342 : vector<16x16xf32>
    %344 = arith.addf %340, %343 : vector<16x16xf32>
    %c16_163 = arith.constant 16 : index
    %345 = memref.load %arg4[%c16_163] : memref<32xf32, #tpu.memory_space<smem>>
    %346 = vector.broadcast %345 : f32 to vector<16x16xf32>
    %347 = arith.addf %344, %346 : vector<16x16xf32>
    %cst_164 = arith.constant 0.000000e+00 : f32
    %348 = vector.broadcast %cst_164 : f32 to vector<16x16xf32>
    %349 = arith.maximumf %347, %348 : vector<16x16xf32>
    %cst_165 = arith.constant dense<0.000000e+00> : vector<16xf32>
    %350 = vector.multi_reduction <add>, %349, %cst_165 [0] : vector<16x16xf32> to vector<16xf32>
    %351 = vector.shape_cast %350 : vector<16xf32> to vector<1x16xf32>
    %cst_166 = arith.constant 6.250000e-02 : f32
    %352 = vector.broadcast %cst_166 : f32 to vector<1x16xf32>
    %353 = arith.mulf %351, %352 : vector<1x16xf32>
    %c17 = arith.constant 17 : index
    %c0_167 = arith.constant 0 : index
    %354 = memref.load %arg3[%c17, %c0_167] : memref<32x3xf32, #tpu.memory_space<smem>>
    %355 = vector.broadcast %354 : f32 to vector<16x16xf32>
    %356 = arith.mulf %2, %355 : vector<16x16xf32>
    %c17_168 = arith.constant 17 : index
    %c1_169 = arith.constant 1 : index
    %357 = memref.load %arg3[%c17_168, %c1_169] : memref<32x3xf32, #tpu.memory_space<smem>>
    %358 = vector.broadcast %357 : f32 to vector<16x16xf32>
    %359 = arith.mulf %5, %358 : vector<16x16xf32>
    %360 = arith.addf %356, %359 : vector<16x16xf32>
    %c17_170 = arith.constant 17 : index
    %c2_171 = arith.constant 2 : index
    %361 = memref.load %arg3[%c17_170, %c2_171] : memref<32x3xf32, #tpu.memory_space<smem>>
    %362 = vector.broadcast %361 : f32 to vector<16x16xf32>
    %363 = arith.mulf %8, %362 : vector<16x16xf32>
    %364 = arith.addf %360, %363 : vector<16x16xf32>
    %c17_172 = arith.constant 17 : index
    %365 = memref.load %arg4[%c17_172] : memref<32xf32, #tpu.memory_space<smem>>
    %366 = vector.broadcast %365 : f32 to vector<16x16xf32>
    %367 = arith.addf %364, %366 : vector<16x16xf32>
    %cst_173 = arith.constant 0.000000e+00 : f32
    %368 = vector.broadcast %cst_173 : f32 to vector<16x16xf32>
    %369 = arith.maximumf %367, %368 : vector<16x16xf32>
    %cst_174 = arith.constant dense<0.000000e+00> : vector<16xf32>
    %370 = vector.multi_reduction <add>, %369, %cst_174 [0] : vector<16x16xf32> to vector<16xf32>
    %371 = vector.shape_cast %370 : vector<16xf32> to vector<1x16xf32>
    %cst_175 = arith.constant 6.250000e-02 : f32
    %372 = vector.broadcast %cst_175 : f32 to vector<1x16xf32>
    %373 = arith.mulf %371, %372 : vector<1x16xf32>
    %c18 = arith.constant 18 : index
    %c0_176 = arith.constant 0 : index
    %374 = memref.load %arg3[%c18, %c0_176] : memref<32x3xf32, #tpu.memory_space<smem>>
    %375 = vector.broadcast %374 : f32 to vector<16x16xf32>
    %376 = arith.mulf %2, %375 : vector<16x16xf32>
    %c18_177 = arith.constant 18 : index
    %c1_178 = arith.constant 1 : index
    %377 = memref.load %arg3[%c18_177, %c1_178] : memref<32x3xf32, #tpu.memory_space<smem>>
    %378 = vector.broadcast %377 : f32 to vector<16x16xf32>
    %379 = arith.mulf %5, %378 : vector<16x16xf32>
    %380 = arith.addf %376, %379 : vector<16x16xf32>
    %c18_179 = arith.constant 18 : index
    %c2_180 = arith.constant 2 : index
    %381 = memref.load %arg3[%c18_179, %c2_180] : memref<32x3xf32, #tpu.memory_space<smem>>
    %382 = vector.broadcast %381 : f32 to vector<16x16xf32>
    %383 = arith.mulf %8, %382 : vector<16x16xf32>
    %384 = arith.addf %380, %383 : vector<16x16xf32>
    %c18_181 = arith.constant 18 : index
    %385 = memref.load %arg4[%c18_181] : memref<32xf32, #tpu.memory_space<smem>>
    %386 = vector.broadcast %385 : f32 to vector<16x16xf32>
    %387 = arith.addf %384, %386 : vector<16x16xf32>
    %cst_182 = arith.constant 0.000000e+00 : f32
    %388 = vector.broadcast %cst_182 : f32 to vector<16x16xf32>
    %389 = arith.maximumf %387, %388 : vector<16x16xf32>
    %cst_183 = arith.constant dense<0.000000e+00> : vector<16xf32>
    %390 = vector.multi_reduction <add>, %389, %cst_183 [0] : vector<16x16xf32> to vector<16xf32>
    %391 = vector.shape_cast %390 : vector<16xf32> to vector<1x16xf32>
    %cst_184 = arith.constant 6.250000e-02 : f32
    %392 = vector.broadcast %cst_184 : f32 to vector<1x16xf32>
    %393 = arith.mulf %391, %392 : vector<1x16xf32>
    %c19 = arith.constant 19 : index
    %c0_185 = arith.constant 0 : index
    %394 = memref.load %arg3[%c19, %c0_185] : memref<32x3xf32, #tpu.memory_space<smem>>
    %395 = vector.broadcast %394 : f32 to vector<16x16xf32>
    %396 = arith.mulf %2, %395 : vector<16x16xf32>
    %c19_186 = arith.constant 19 : index
    %c1_187 = arith.constant 1 : index
    %397 = memref.load %arg3[%c19_186, %c1_187] : memref<32x3xf32, #tpu.memory_space<smem>>
    %398 = vector.broadcast %397 : f32 to vector<16x16xf32>
    %399 = arith.mulf %5, %398 : vector<16x16xf32>
    %400 = arith.addf %396, %399 : vector<16x16xf32>
    %c19_188 = arith.constant 19 : index
    %c2_189 = arith.constant 2 : index
    %401 = memref.load %arg3[%c19_188, %c2_189] : memref<32x3xf32, #tpu.memory_space<smem>>
    %402 = vector.broadcast %401 : f32 to vector<16x16xf32>
    %403 = arith.mulf %8, %402 : vector<16x16xf32>
    %404 = arith.addf %400, %403 : vector<16x16xf32>
    %c19_190 = arith.constant 19 : index
    %405 = memref.load %arg4[%c19_190] : memref<32xf32, #tpu.memory_space<smem>>
    %406 = vector.broadcast %405 : f32 to vector<16x16xf32>
    %407 = arith.addf %404, %406 : vector<16x16xf32>
    %cst_191 = arith.constant 0.000000e+00 : f32
    %408 = vector.broadcast %cst_191 : f32 to vector<16x16xf32>
    %409 = arith.maximumf %407, %408 : vector<16x16xf32>
    %cst_192 = arith.constant dense<0.000000e+00> : vector<16xf32>
    %410 = vector.multi_reduction <add>, %409, %cst_192 [0] : vector<16x16xf32> to vector<16xf32>
    %411 = vector.shape_cast %410 : vector<16xf32> to vector<1x16xf32>
    %cst_193 = arith.constant 6.250000e-02 : f32
    %412 = vector.broadcast %cst_193 : f32 to vector<1x16xf32>
    %413 = arith.mulf %411, %412 : vector<1x16xf32>
    %c20 = arith.constant 20 : index
    %c0_194 = arith.constant 0 : index
    %414 = memref.load %arg3[%c20, %c0_194] : memref<32x3xf32, #tpu.memory_space<smem>>
    %415 = vector.broadcast %414 : f32 to vector<16x16xf32>
    %416 = arith.mulf %2, %415 : vector<16x16xf32>
    %c20_195 = arith.constant 20 : index
    %c1_196 = arith.constant 1 : index
    %417 = memref.load %arg3[%c20_195, %c1_196] : memref<32x3xf32, #tpu.memory_space<smem>>
    %418 = vector.broadcast %417 : f32 to vector<16x16xf32>
    %419 = arith.mulf %5, %418 : vector<16x16xf32>
    %420 = arith.addf %416, %419 : vector<16x16xf32>
    %c20_197 = arith.constant 20 : index
    %c2_198 = arith.constant 2 : index
    %421 = memref.load %arg3[%c20_197, %c2_198] : memref<32x3xf32, #tpu.memory_space<smem>>
    %422 = vector.broadcast %421 : f32 to vector<16x16xf32>
    %423 = arith.mulf %8, %422 : vector<16x16xf32>
    %424 = arith.addf %420, %423 : vector<16x16xf32>
    %c20_199 = arith.constant 20 : index
    %425 = memref.load %arg4[%c20_199] : memref<32xf32, #tpu.memory_space<smem>>
    %426 = vector.broadcast %425 : f32 to vector<16x16xf32>
    %427 = arith.addf %424, %426 : vector<16x16xf32>
    %cst_200 = arith.constant 0.000000e+00 : f32
    %428 = vector.broadcast %cst_200 : f32 to vector<16x16xf32>
    %429 = arith.maximumf %427, %428 : vector<16x16xf32>
    %cst_201 = arith.constant dense<0.000000e+00> : vector<16xf32>
    %430 = vector.multi_reduction <add>, %429, %cst_201 [0] : vector<16x16xf32> to vector<16xf32>
    %431 = vector.shape_cast %430 : vector<16xf32> to vector<1x16xf32>
    %cst_202 = arith.constant 6.250000e-02 : f32
    %432 = vector.broadcast %cst_202 : f32 to vector<1x16xf32>
    %433 = arith.mulf %431, %432 : vector<1x16xf32>
    %c21 = arith.constant 21 : index
    %c0_203 = arith.constant 0 : index
    %434 = memref.load %arg3[%c21, %c0_203] : memref<32x3xf32, #tpu.memory_space<smem>>
    %435 = vector.broadcast %434 : f32 to vector<16x16xf32>
    %436 = arith.mulf %2, %435 : vector<16x16xf32>
    %c21_204 = arith.constant 21 : index
    %c1_205 = arith.constant 1 : index
    %437 = memref.load %arg3[%c21_204, %c1_205] : memref<32x3xf32, #tpu.memory_space<smem>>
    %438 = vector.broadcast %437 : f32 to vector<16x16xf32>
    %439 = arith.mulf %5, %438 : vector<16x16xf32>
    %440 = arith.addf %436, %439 : vector<16x16xf32>
    %c21_206 = arith.constant 21 : index
    %c2_207 = arith.constant 2 : index
    %441 = memref.load %arg3[%c21_206, %c2_207] : memref<32x3xf32, #tpu.memory_space<smem>>
    %442 = vector.broadcast %441 : f32 to vector<16x16xf32>
    %443 = arith.mulf %8, %442 : vector<16x16xf32>
    %444 = arith.addf %440, %443 : vector<16x16xf32>
    %c21_208 = arith.constant 21 : index
    %445 = memref.load %arg4[%c21_208] : memref<32xf32, #tpu.memory_space<smem>>
    %446 = vector.broadcast %445 : f32 to vector<16x16xf32>
    %447 = arith.addf %444, %446 : vector<16x16xf32>
    %cst_209 = arith.constant 0.000000e+00 : f32
    %448 = vector.broadcast %cst_209 : f32 to vector<16x16xf32>
    %449 = arith.maximumf %447, %448 : vector<16x16xf32>
    %cst_210 = arith.constant dense<0.000000e+00> : vector<16xf32>
    %450 = vector.multi_reduction <add>, %449, %cst_210 [0] : vector<16x16xf32> to vector<16xf32>
    %451 = vector.shape_cast %450 : vector<16xf32> to vector<1x16xf32>
    %cst_211 = arith.constant 6.250000e-02 : f32
    %452 = vector.broadcast %cst_211 : f32 to vector<1x16xf32>
    %453 = arith.mulf %451, %452 : vector<1x16xf32>
    %c22 = arith.constant 22 : index
    %c0_212 = arith.constant 0 : index
    %454 = memref.load %arg3[%c22, %c0_212] : memref<32x3xf32, #tpu.memory_space<smem>>
    %455 = vector.broadcast %454 : f32 to vector<16x16xf32>
    %456 = arith.mulf %2, %455 : vector<16x16xf32>
    %c22_213 = arith.constant 22 : index
    %c1_214 = arith.constant 1 : index
    %457 = memref.load %arg3[%c22_213, %c1_214] : memref<32x3xf32, #tpu.memory_space<smem>>
    %458 = vector.broadcast %457 : f32 to vector<16x16xf32>
    %459 = arith.mulf %5, %458 : vector<16x16xf32>
    %460 = arith.addf %456, %459 : vector<16x16xf32>
    %c22_215 = arith.constant 22 : index
    %c2_216 = arith.constant 2 : index
    %461 = memref.load %arg3[%c22_215, %c2_216] : memref<32x3xf32, #tpu.memory_space<smem>>
    %462 = vector.broadcast %461 : f32 to vector<16x16xf32>
    %463 = arith.mulf %8, %462 : vector<16x16xf32>
    %464 = arith.addf %460, %463 : vector<16x16xf32>
    %c22_217 = arith.constant 22 : index
    %465 = memref.load %arg4[%c22_217] : memref<32xf32, #tpu.memory_space<smem>>
    %466 = vector.broadcast %465 : f32 to vector<16x16xf32>
    %467 = arith.addf %464, %466 : vector<16x16xf32>
    %cst_218 = arith.constant 0.000000e+00 : f32
    %468 = vector.broadcast %cst_218 : f32 to vector<16x16xf32>
    %469 = arith.maximumf %467, %468 : vector<16x16xf32>
    %cst_219 = arith.constant dense<0.000000e+00> : vector<16xf32>
    %470 = vector.multi_reduction <add>, %469, %cst_219 [0] : vector<16x16xf32> to vector<16xf32>
    %471 = vector.shape_cast %470 : vector<16xf32> to vector<1x16xf32>
    %cst_220 = arith.constant 6.250000e-02 : f32
    %472 = vector.broadcast %cst_220 : f32 to vector<1x16xf32>
    %473 = arith.mulf %471, %472 : vector<1x16xf32>
    %c23 = arith.constant 23 : index
    %c0_221 = arith.constant 0 : index
    %474 = memref.load %arg3[%c23, %c0_221] : memref<32x3xf32, #tpu.memory_space<smem>>
    %475 = vector.broadcast %474 : f32 to vector<16x16xf32>
    %476 = arith.mulf %2, %475 : vector<16x16xf32>
    %c23_222 = arith.constant 23 : index
    %c1_223 = arith.constant 1 : index
    %477 = memref.load %arg3[%c23_222, %c1_223] : memref<32x3xf32, #tpu.memory_space<smem>>
    %478 = vector.broadcast %477 : f32 to vector<16x16xf32>
    %479 = arith.mulf %5, %478 : vector<16x16xf32>
    %480 = arith.addf %476, %479 : vector<16x16xf32>
    %c23_224 = arith.constant 23 : index
    %c2_225 = arith.constant 2 : index
    %481 = memref.load %arg3[%c23_224, %c2_225] : memref<32x3xf32, #tpu.memory_space<smem>>
    %482 = vector.broadcast %481 : f32 to vector<16x16xf32>
    %483 = arith.mulf %8, %482 : vector<16x16xf32>
    %484 = arith.addf %480, %483 : vector<16x16xf32>
    %c23_226 = arith.constant 23 : index
    %485 = memref.load %arg4[%c23_226] : memref<32xf32, #tpu.memory_space<smem>>
    %486 = vector.broadcast %485 : f32 to vector<16x16xf32>
    %487 = arith.addf %484, %486 : vector<16x16xf32>
    %cst_227 = arith.constant 0.000000e+00 : f32
    %488 = vector.broadcast %cst_227 : f32 to vector<16x16xf32>
    %489 = arith.maximumf %487, %488 : vector<16x16xf32>
    %cst_228 = arith.constant dense<0.000000e+00> : vector<16xf32>
    %490 = vector.multi_reduction <add>, %489, %cst_228 [0] : vector<16x16xf32> to vector<16xf32>
    %491 = vector.shape_cast %490 : vector<16xf32> to vector<1x16xf32>
    %cst_229 = arith.constant 6.250000e-02 : f32
    %492 = vector.broadcast %cst_229 : f32 to vector<1x16xf32>
    %493 = arith.mulf %491, %492 : vector<1x16xf32>
    %c24 = arith.constant 24 : index
    %c0_230 = arith.constant 0 : index
    %494 = memref.load %arg3[%c24, %c0_230] : memref<32x3xf32, #tpu.memory_space<smem>>
    %495 = vector.broadcast %494 : f32 to vector<16x16xf32>
    %496 = arith.mulf %2, %495 : vector<16x16xf32>
    %c24_231 = arith.constant 24 : index
    %c1_232 = arith.constant 1 : index
    %497 = memref.load %arg3[%c24_231, %c1_232] : memref<32x3xf32, #tpu.memory_space<smem>>
    %498 = vector.broadcast %497 : f32 to vector<16x16xf32>
    %499 = arith.mulf %5, %498 : vector<16x16xf32>
    %500 = arith.addf %496, %499 : vector<16x16xf32>
    %c24_233 = arith.constant 24 : index
    %c2_234 = arith.constant 2 : index
    %501 = memref.load %arg3[%c24_233, %c2_234] : memref<32x3xf32, #tpu.memory_space<smem>>
    %502 = vector.broadcast %501 : f32 to vector<16x16xf32>
    %503 = arith.mulf %8, %502 : vector<16x16xf32>
    %504 = arith.addf %500, %503 : vector<16x16xf32>
    %c24_235 = arith.constant 24 : index
    %505 = memref.load %arg4[%c24_235] : memref<32xf32, #tpu.memory_space<smem>>
    %506 = vector.broadcast %505 : f32 to vector<16x16xf32>
    %507 = arith.addf %504, %506 : vector<16x16xf32>
    %cst_236 = arith.constant 0.000000e+00 : f32
    %508 = vector.broadcast %cst_236 : f32 to vector<16x16xf32>
    %509 = arith.maximumf %507, %508 : vector<16x16xf32>
    %cst_237 = arith.constant dense<0.000000e+00> : vector<16xf32>
    %510 = vector.multi_reduction <add>, %509, %cst_237 [0] : vector<16x16xf32> to vector<16xf32>
    %511 = vector.shape_cast %510 : vector<16xf32> to vector<1x16xf32>
    %cst_238 = arith.constant 6.250000e-02 : f32
    %512 = vector.broadcast %cst_238 : f32 to vector<1x16xf32>
    %513 = arith.mulf %511, %512 : vector<1x16xf32>
    %c25 = arith.constant 25 : index
    %c0_239 = arith.constant 0 : index
    %514 = memref.load %arg3[%c25, %c0_239] : memref<32x3xf32, #tpu.memory_space<smem>>
    %515 = vector.broadcast %514 : f32 to vector<16x16xf32>
    %516 = arith.mulf %2, %515 : vector<16x16xf32>
    %c25_240 = arith.constant 25 : index
    %c1_241 = arith.constant 1 : index
    %517 = memref.load %arg3[%c25_240, %c1_241] : memref<32x3xf32, #tpu.memory_space<smem>>
    %518 = vector.broadcast %517 : f32 to vector<16x16xf32>
    %519 = arith.mulf %5, %518 : vector<16x16xf32>
    %520 = arith.addf %516, %519 : vector<16x16xf32>
    %c25_242 = arith.constant 25 : index
    %c2_243 = arith.constant 2 : index
    %521 = memref.load %arg3[%c25_242, %c2_243] : memref<32x3xf32, #tpu.memory_space<smem>>
    %522 = vector.broadcast %521 : f32 to vector<16x16xf32>
    %523 = arith.mulf %8, %522 : vector<16x16xf32>
    %524 = arith.addf %520, %523 : vector<16x16xf32>
    %c25_244 = arith.constant 25 : index
    %525 = memref.load %arg4[%c25_244] : memref<32xf32, #tpu.memory_space<smem>>
    %526 = vector.broadcast %525 : f32 to vector<16x16xf32>
    %527 = arith.addf %524, %526 : vector<16x16xf32>
    %cst_245 = arith.constant 0.000000e+00 : f32
    %528 = vector.broadcast %cst_245 : f32 to vector<16x16xf32>
    %529 = arith.maximumf %527, %528 : vector<16x16xf32>
    %cst_246 = arith.constant dense<0.000000e+00> : vector<16xf32>
    %530 = vector.multi_reduction <add>, %529, %cst_246 [0] : vector<16x16xf32> to vector<16xf32>
    %531 = vector.shape_cast %530 : vector<16xf32> to vector<1x16xf32>
    %cst_247 = arith.constant 6.250000e-02 : f32
    %532 = vector.broadcast %cst_247 : f32 to vector<1x16xf32>
    %533 = arith.mulf %531, %532 : vector<1x16xf32>
    %c26 = arith.constant 26 : index
    %c0_248 = arith.constant 0 : index
    %534 = memref.load %arg3[%c26, %c0_248] : memref<32x3xf32, #tpu.memory_space<smem>>
    %535 = vector.broadcast %534 : f32 to vector<16x16xf32>
    %536 = arith.mulf %2, %535 : vector<16x16xf32>
    %c26_249 = arith.constant 26 : index
    %c1_250 = arith.constant 1 : index
    %537 = memref.load %arg3[%c26_249, %c1_250] : memref<32x3xf32, #tpu.memory_space<smem>>
    %538 = vector.broadcast %537 : f32 to vector<16x16xf32>
    %539 = arith.mulf %5, %538 : vector<16x16xf32>
    %540 = arith.addf %536, %539 : vector<16x16xf32>
    %c26_251 = arith.constant 26 : index
    %c2_252 = arith.constant 2 : index
    %541 = memref.load %arg3[%c26_251, %c2_252] : memref<32x3xf32, #tpu.memory_space<smem>>
    %542 = vector.broadcast %541 : f32 to vector<16x16xf32>
    %543 = arith.mulf %8, %542 : vector<16x16xf32>
    %544 = arith.addf %540, %543 : vector<16x16xf32>
    %c26_253 = arith.constant 26 : index
    %545 = memref.load %arg4[%c26_253] : memref<32xf32, #tpu.memory_space<smem>>
    %546 = vector.broadcast %545 : f32 to vector<16x16xf32>
    %547 = arith.addf %544, %546 : vector<16x16xf32>
    %cst_254 = arith.constant 0.000000e+00 : f32
    %548 = vector.broadcast %cst_254 : f32 to vector<16x16xf32>
    %549 = arith.maximumf %547, %548 : vector<16x16xf32>
    %cst_255 = arith.constant dense<0.000000e+00> : vector<16xf32>
    %550 = vector.multi_reduction <add>, %549, %cst_255 [0] : vector<16x16xf32> to vector<16xf32>
    %551 = vector.shape_cast %550 : vector<16xf32> to vector<1x16xf32>
    %cst_256 = arith.constant 6.250000e-02 : f32
    %552 = vector.broadcast %cst_256 : f32 to vector<1x16xf32>
    %553 = arith.mulf %551, %552 : vector<1x16xf32>
    %c27 = arith.constant 27 : index
    %c0_257 = arith.constant 0 : index
    %554 = memref.load %arg3[%c27, %c0_257] : memref<32x3xf32, #tpu.memory_space<smem>>
    %555 = vector.broadcast %554 : f32 to vector<16x16xf32>
    %556 = arith.mulf %2, %555 : vector<16x16xf32>
    %c27_258 = arith.constant 27 : index
    %c1_259 = arith.constant 1 : index
    %557 = memref.load %arg3[%c27_258, %c1_259] : memref<32x3xf32, #tpu.memory_space<smem>>
    %558 = vector.broadcast %557 : f32 to vector<16x16xf32>
    %559 = arith.mulf %5, %558 : vector<16x16xf32>
    %560 = arith.addf %556, %559 : vector<16x16xf32>
    %c27_260 = arith.constant 27 : index
    %c2_261 = arith.constant 2 : index
    %561 = memref.load %arg3[%c27_260, %c2_261] : memref<32x3xf32, #tpu.memory_space<smem>>
    %562 = vector.broadcast %561 : f32 to vector<16x16xf32>
    %563 = arith.mulf %8, %562 : vector<16x16xf32>
    %564 = arith.addf %560, %563 : vector<16x16xf32>
    %c27_262 = arith.constant 27 : index
    %565 = memref.load %arg4[%c27_262] : memref<32xf32, #tpu.memory_space<smem>>
    %566 = vector.broadcast %565 : f32 to vector<16x16xf32>
    %567 = arith.addf %564, %566 : vector<16x16xf32>
    %cst_263 = arith.constant 0.000000e+00 : f32
    %568 = vector.broadcast %cst_263 : f32 to vector<16x16xf32>
    %569 = arith.maximumf %567, %568 : vector<16x16xf32>
    %cst_264 = arith.constant dense<0.000000e+00> : vector<16xf32>
    %570 = vector.multi_reduction <add>, %569, %cst_264 [0] : vector<16x16xf32> to vector<16xf32>
    %571 = vector.shape_cast %570 : vector<16xf32> to vector<1x16xf32>
    %cst_265 = arith.constant 6.250000e-02 : f32
    %572 = vector.broadcast %cst_265 : f32 to vector<1x16xf32>
    %573 = arith.mulf %571, %572 : vector<1x16xf32>
    %c28 = arith.constant 28 : index
    %c0_266 = arith.constant 0 : index
    %574 = memref.load %arg3[%c28, %c0_266] : memref<32x3xf32, #tpu.memory_space<smem>>
    %575 = vector.broadcast %574 : f32 to vector<16x16xf32>
    %576 = arith.mulf %2, %575 : vector<16x16xf32>
    %c28_267 = arith.constant 28 : index
    %c1_268 = arith.constant 1 : index
    %577 = memref.load %arg3[%c28_267, %c1_268] : memref<32x3xf32, #tpu.memory_space<smem>>
    %578 = vector.broadcast %577 : f32 to vector<16x16xf32>
    %579 = arith.mulf %5, %578 : vector<16x16xf32>
    %580 = arith.addf %576, %579 : vector<16x16xf32>
    %c28_269 = arith.constant 28 : index
    %c2_270 = arith.constant 2 : index
    %581 = memref.load %arg3[%c28_269, %c2_270] : memref<32x3xf32, #tpu.memory_space<smem>>
    %582 = vector.broadcast %581 : f32 to vector<16x16xf32>
    %583 = arith.mulf %8, %582 : vector<16x16xf32>
    %584 = arith.addf %580, %583 : vector<16x16xf32>
    %c28_271 = arith.constant 28 : index
    %585 = memref.load %arg4[%c28_271] : memref<32xf32, #tpu.memory_space<smem>>
    %586 = vector.broadcast %585 : f32 to vector<16x16xf32>
    %587 = arith.addf %584, %586 : vector<16x16xf32>
    %cst_272 = arith.constant 0.000000e+00 : f32
    %588 = vector.broadcast %cst_272 : f32 to vector<16x16xf32>
    %589 = arith.maximumf %587, %588 : vector<16x16xf32>
    %cst_273 = arith.constant dense<0.000000e+00> : vector<16xf32>
    %590 = vector.multi_reduction <add>, %589, %cst_273 [0] : vector<16x16xf32> to vector<16xf32>
    %591 = vector.shape_cast %590 : vector<16xf32> to vector<1x16xf32>
    %cst_274 = arith.constant 6.250000e-02 : f32
    %592 = vector.broadcast %cst_274 : f32 to vector<1x16xf32>
    %593 = arith.mulf %591, %592 : vector<1x16xf32>
    %c29 = arith.constant 29 : index
    %c0_275 = arith.constant 0 : index
    %594 = memref.load %arg3[%c29, %c0_275] : memref<32x3xf32, #tpu.memory_space<smem>>
    %595 = vector.broadcast %594 : f32 to vector<16x16xf32>
    %596 = arith.mulf %2, %595 : vector<16x16xf32>
    %c29_276 = arith.constant 29 : index
    %c1_277 = arith.constant 1 : index
    %597 = memref.load %arg3[%c29_276, %c1_277] : memref<32x3xf32, #tpu.memory_space<smem>>
    %598 = vector.broadcast %597 : f32 to vector<16x16xf32>
    %599 = arith.mulf %5, %598 : vector<16x16xf32>
    %600 = arith.addf %596, %599 : vector<16x16xf32>
    %c29_278 = arith.constant 29 : index
    %c2_279 = arith.constant 2 : index
    %601 = memref.load %arg3[%c29_278, %c2_279] : memref<32x3xf32, #tpu.memory_space<smem>>
    %602 = vector.broadcast %601 : f32 to vector<16x16xf32>
    %603 = arith.mulf %8, %602 : vector<16x16xf32>
    %604 = arith.addf %600, %603 : vector<16x16xf32>
    %c29_280 = arith.constant 29 : index
    %605 = memref.load %arg4[%c29_280] : memref<32xf32, #tpu.memory_space<smem>>
    %606 = vector.broadcast %605 : f32 to vector<16x16xf32>
    %607 = arith.addf %604, %606 : vector<16x16xf32>
    %cst_281 = arith.constant 0.000000e+00 : f32
    %608 = vector.broadcast %cst_281 : f32 to vector<16x16xf32>
    %609 = arith.maximumf %607, %608 : vector<16x16xf32>
    %cst_282 = arith.constant dense<0.000000e+00> : vector<16xf32>
    %610 = vector.multi_reduction <add>, %609, %cst_282 [0] : vector<16x16xf32> to vector<16xf32>
    %611 = vector.shape_cast %610 : vector<16xf32> to vector<1x16xf32>
    %cst_283 = arith.constant 6.250000e-02 : f32
    %612 = vector.broadcast %cst_283 : f32 to vector<1x16xf32>
    %613 = arith.mulf %611, %612 : vector<1x16xf32>
    %c30 = arith.constant 30 : index
    %c0_284 = arith.constant 0 : index
    %614 = memref.load %arg3[%c30, %c0_284] : memref<32x3xf32, #tpu.memory_space<smem>>
    %615 = vector.broadcast %614 : f32 to vector<16x16xf32>
    %616 = arith.mulf %2, %615 : vector<16x16xf32>
    %c30_285 = arith.constant 30 : index
    %c1_286 = arith.constant 1 : index
    %617 = memref.load %arg3[%c30_285, %c1_286] : memref<32x3xf32, #tpu.memory_space<smem>>
    %618 = vector.broadcast %617 : f32 to vector<16x16xf32>
    %619 = arith.mulf %5, %618 : vector<16x16xf32>
    %620 = arith.addf %616, %619 : vector<16x16xf32>
    %c30_287 = arith.constant 30 : index
    %c2_288 = arith.constant 2 : index
    %621 = memref.load %arg3[%c30_287, %c2_288] : memref<32x3xf32, #tpu.memory_space<smem>>
    %622 = vector.broadcast %621 : f32 to vector<16x16xf32>
    %623 = arith.mulf %8, %622 : vector<16x16xf32>
    %624 = arith.addf %620, %623 : vector<16x16xf32>
    %c30_289 = arith.constant 30 : index
    %625 = memref.load %arg4[%c30_289] : memref<32xf32, #tpu.memory_space<smem>>
    %626 = vector.broadcast %625 : f32 to vector<16x16xf32>
    %627 = arith.addf %624, %626 : vector<16x16xf32>
    %cst_290 = arith.constant 0.000000e+00 : f32
    %628 = vector.broadcast %cst_290 : f32 to vector<16x16xf32>
    %629 = arith.maximumf %627, %628 : vector<16x16xf32>
    %cst_291 = arith.constant dense<0.000000e+00> : vector<16xf32>
    %630 = vector.multi_reduction <add>, %629, %cst_291 [0] : vector<16x16xf32> to vector<16xf32>
    %631 = vector.shape_cast %630 : vector<16xf32> to vector<1x16xf32>
    %cst_292 = arith.constant 6.250000e-02 : f32
    %632 = vector.broadcast %cst_292 : f32 to vector<1x16xf32>
    %633 = arith.mulf %631, %632 : vector<1x16xf32>
    %c31 = arith.constant 31 : index
    %c0_293 = arith.constant 0 : index
    %634 = memref.load %arg3[%c31, %c0_293] : memref<32x3xf32, #tpu.memory_space<smem>>
    %635 = vector.broadcast %634 : f32 to vector<16x16xf32>
    %636 = arith.mulf %2, %635 : vector<16x16xf32>
    %c31_294 = arith.constant 31 : index
    %c1_295 = arith.constant 1 : index
    %637 = memref.load %arg3[%c31_294, %c1_295] : memref<32x3xf32, #tpu.memory_space<smem>>
    %638 = vector.broadcast %637 : f32 to vector<16x16xf32>
    %639 = arith.mulf %5, %638 : vector<16x16xf32>
    %640 = arith.addf %636, %639 : vector<16x16xf32>
    %c31_296 = arith.constant 31 : index
    %c2_297 = arith.constant 2 : index
    %641 = memref.load %arg3[%c31_296, %c2_297] : memref<32x3xf32, #tpu.memory_space<smem>>
    %642 = vector.broadcast %641 : f32 to vector<16x16xf32>
    %643 = arith.mulf %8, %642 : vector<16x16xf32>
    %644 = arith.addf %640, %643 : vector<16x16xf32>
    %c31_298 = arith.constant 31 : index
    %645 = memref.load %arg4[%c31_298] : memref<32xf32, #tpu.memory_space<smem>>
    %646 = vector.broadcast %645 : f32 to vector<16x16xf32>
    %647 = arith.addf %644, %646 : vector<16x16xf32>
    %cst_299 = arith.constant 0.000000e+00 : f32
    %648 = vector.broadcast %cst_299 : f32 to vector<16x16xf32>
    %649 = arith.maximumf %647, %648 : vector<16x16xf32>
    %cst_300 = arith.constant dense<0.000000e+00> : vector<16xf32>
    %650 = vector.multi_reduction <add>, %649, %cst_300 [0] : vector<16x16xf32> to vector<16xf32>
    %651 = vector.shape_cast %650 : vector<16xf32> to vector<1x16xf32>
    %cst_301 = arith.constant 6.250000e-02 : f32
    %652 = vector.broadcast %cst_301 : f32 to vector<1x16xf32>
    %653 = arith.mulf %651, %652 : vector<1x16xf32>
    %654 = tpu.concatenate %353, %373, %393, %413, %433, %453, %473, %493, %513, %533, %553, %573, %593, %613, %633, %653 in 0 : vector<1x16xf32>, vector<1x16xf32>, vector<1x16xf32>, vector<1x16xf32>, vector<1x16xf32>, vector<1x16xf32>, vector<1x16xf32>, vector<1x16xf32>, vector<1x16xf32>, vector<1x16xf32>, vector<1x16xf32>, vector<1x16xf32>, vector<1x16xf32>, vector<1x16xf32>, vector<1x16xf32>, vector<1x16xf32> -> vector<16x16xf32>
    %655 = arith.truncf %654 : vector<16x16xf32> to vector<16x16xbf16>
    %c0_302 = arith.constant 0 : index
    %c16_303 = arith.constant 16 : index
    %c0_304 = arith.constant 0 : index
    %656 = vector.load %arg5[%c0_302, %c16_303, %c0_304] : memref<1x32x16xbf16, #tpu.memory_space<vmem>>, vector<1x16x16xbf16>
    %657 = vector.shape_cast %656 : vector<1x16x16xbf16> to vector<16x16xbf16>
    %658 = vector.shape_cast %655 : vector<16x16xbf16> to vector<1x16x16xbf16>
    tpu.vector_store %arg5[%c0_302, %c16_303, %c0_304], %658 {strides = array<i32>} : memref<1x32x16xbf16, #tpu.memory_space<vmem>>, vector<1x16x16xbf16>,
    return
  }
  func.func @transform_0(%arg0: i32, %arg1: i32) -> (i32, i32, i32, i32) {
    %c0_i32 = arith.constant 0 : i32
    %c0_i32_0 = arith.constant 0 : i32
    %c0_i32_1 = arith.constant 0 : i32
    return %arg0, %c0_i32, %c0_i32_0, %arg1 : i32, i32, i32, i32
  }
  func.func @transform_1(%arg0: i32, %arg1: i32) -> (i32, i32) {
    %c0_i32 = arith.constant 0 : i32
    %c0_i32_0 = arith.constant 0 : i32
    %c0_i32_1 = arith.constant 0 : i32
    return %c0_i32, %c0_i32_0 : i32, i32
  }
  func.func @transform_2(%arg0: i32, %arg1: i32) -> i32 {
    %c0_i32 = arith.constant 0 : i32
    %c0_i32_0 = arith.constant 0 : i32
    return %c0_i32 : i32
  }
  func.func @transform_3(%arg0: i32, %arg1: i32) -> (i32, i32, i32) {
    %c0_i32 = arith.constant 0 : i32
    %c0_i32_0 = arith.constant 0 : i32
    return %arg0, %c0_i32, %arg1 : i32, i32, i32
  }
}

</mosaic_0001>

<bundles_post_ra>
// kernel: tpu_custom_call.1
= control target key start
LH: loop header
LB: loop body
LE: loop exit
PB: predicated region body
PF: predicated region fallthrough
CT: control target
= control target key end

     0   :  { %8 = vsyncpa [#allocation3], 0  ;;  %s2775_s0 = inlined_call_operand.hbm [shape: bf16[2,3,16,16], index: 0, kind: input, shape index: {}]   ;;  %s2776_s1 = inlined_call_operand.vmem [shape: f32[32,3], index: 1, kind: input, shape index: {}]   ;;  %s2777_s2 = inlined_call_operand.vmem [shape: f32[32], index: 2, kind: input, shape index: {}]   ;;  %s2778_s3 = inlined_call_operand.vmem [shape: bf16[2,32,16], index: 3, kind: output, shape index: {}]  }
   0x1   :  { %10 = vsyncpa [#allocation3 + $0x1], 0 }
   0x2   :  { %11 = vsyncpa [#allocation4], 0 }
   0x3   :  { %12 = vsyncpa [#allocation7], 0  ;;  %s1848_s12 = smov 0   ;;  %s1850_s13 = smov 0  }
   0x4   :  { %s1852_s14 = smov 0   ;;  %s1854_s15 = smov 0  }
   0x5   :  { %s1856_s16 = smov 0   ;;  %s1858_s17 = smov 0  }
   0x6 LB: > { %s1451_s18 = sadd.s32 4294967295, %s1819_s17   ;;  %p52_p0 = scmp.ne.s32.totalorder %s1803_s13, %s1799_s12  ;;  %s1819_s17 = sphi %s1858_s17, %s18_s17   ;;  %s1815_s16 = sphi %s1856_s16, %s2795_s16   ;;  %s1811_s15 = sphi %s1854_s15, %s2794_s15   ;;  %s1807_s14 = sphi %s1852_s14, %s2793_s14   ;;  %s1803_s13 = sphi %s1850_s13, %s2792_s13   ;;  %s1799_s12 = sphi %s1848_s12, %s2791_s12  }
   0x7   : > { %p1878_p1 = scmp.eq.s32.totalorder %s1451_s18, 0  ;;  %p1453_p2 = scmp.ge.s32.totalorder %s1819_s17, 1 }
   0x8   : > { %p133_p3 = scmp.lt.s32.totalorder %s1819_s17, 3  ;;  %s145_s23 = sshll.u32 %s2776_s1, 4  ;;  %s146_s23 = int_to_ptr.vmem [resolvable:$true] %s145_s23 }
   0x9   : > { %s2783_s19 = scalar_select %p1878_p1, 1, 0 }
   0xa   : > { %p1886_p4 = por %p1878_p1, %p52_p0  ;;  %p1893_p5 = pnand %p1453_p2, %p133_p3 }
   0xb   : > { %s159_s27 = sshll.u32 %s2777_s2, 4  ;;  %s1701_s29 = scalar_lea.vmem %s146_s23, 512  ;;  %s160_s27 = int_to_ptr.vmem [resolvable:$true] %s159_s27 }
   0xc   : > { %s2784_s20 = scalar_select %p1886_p4, 1, 0 }
   0xd   : > { %s2785_s24 = scalar_select %p1893_p5, 1, 0 }
   0xe   : > { %p1631_p6 = pneg %p1893_p5  ;;  %p1702_p8 = scmp.ne.s32.totalorder %s146_s23, %s1701_s29 }
   0xf   : > { %p1709_p12 = scmp.lt.s32.totalorder %s146_s23, %s146_s23  ;;  %p1710_p13 = scmp.lt.s32.totalorder %s1701_s29, %s1701_s29 }
  0x10   : > { %p1904_p7 = pnand %p1631_p6, %p1878_p1 }
  0x11   : > { %p1711_p0 = por %p1710_p13, %p1709_p12 }
  0x12   : > { %p1703_p9 = pneg %p1904_p7 }
  0x14   : > { %p1704_p10 = pnand %p1703_p9, %p1702_p8 }
  0x16   : > { %p1705_p11 = pneg %p1704_p10 }
  0x18   : > { %p1712_p2 = pnand %p1711_p0, %p1705_p11 }
  0x1a   : > { %1715 = shalt.err (!%p1712_p2)
}
  0x1b   : > { %s1821_s30 = smov [#allocation5]   ;;  %s1822_s4 = smov 128  }
  0x1c   : > { %s1823_s5 = smov 8   ;;  %s1716_s6 = scalar_lea.vmem %s160_s27, 16 }
  0x1d   : > { %1634 = dma.vmem_to_smem (!%p1904_p7), %s146_s23, 512, %s1821_s30, [#allocation4], %s1822_s4, %s1822_s4, %s1823_s5  }
  0x1e   : > { %p1717_p3 = scmp.ne.s32.totalorder %s160_s27, %s1716_s6  ;;  %p1724_p8 = scmp.lt.s32.totalorder %s160_s27, %s160_s27 }
  0x1f   : > { %p1725_p10 = scmp.lt.s32.totalorder %s1716_s6, %s1716_s6 }
  0x20   : > { %p1719_p6 = pnand %p1717_p3, %p1703_p9 }
  0x21   : > { %p1726_p4 = por %p1725_p10, %p1724_p8 }
  0x22   : > { %p1720_p1 = pneg %p1719_p6 }
  0x24   : > { %p1727_p5 = pnand %p1726_p4, %p1720_p1 }
  0x26   : > { %1730 = shalt.err (!%p1727_p5)
}
  0x27   : > { %s1824_s7 = smov [#allocation6]   ;;  %s30_s8 = sadd.s32 1, %s1815_s16 }
  0x28   : > { %1637 = dma.vmem_to_smem (!%p1904_p7), %s160_s27, 16, %s1824_s7, [#allocation7]  }
  0x29   : > { %s39_s9 = sadd.s32 1, %s1807_s14  ;;  %p32_p9 = scmp.ge.s32.totalorder %s30_s8, 2 }
  0x2a   : > { %p46_p11 = scmp.ne.s32.totalorder %s1807_s14, %s1803_s13  ;;  %p47_p1 = scmp.eq.s32.totalorder %s1819_s17, 0 }
  0x2b   : > { %p1644_p4 = scmp.lt.s32.totalorder %s1819_s17, 2  ;;  %s2797_s8 = smov (%p32_p9, %s30_s8), 0 }
  0x2c   : > { %p48_p5 = por %p47_p1, %p46_p11  ;;  %s170_s10 = sand.u32 1, %s1807_s14  }
  0x2d   : > { %s34_s11 = ssub.s32 %s1815_s16, %s2797_s8  ;;  %s1618_s12 = smul.u32 24, %s170_s10 }
  0x2e   : > { %p37_p12 = scmp.eq.s32.totalorder %s34_s11, 0  ;;  %s1619_s18 = smul.u32 384, %s1815_s16 }
  0x2f   : > { %p1932_p13 = pnand %p1644_p4, %p48_p5  ;;  %s174_s27 = scalar_lea.vmem [#allocation2], %s1618_s12 }
  0x30   : > { %s1937_s22 = scalar_select %p37_p12, %s1807_s14, %s39_s9  }
  0x31   : > { %s1942_s26 = scalar_lea.hbm %s2775_s0, %s1619_s18  ;;  %s182_s28 = sshll.u32 %s174_s27, 4  ;;  %s1944_s28 = int_to_ptr.vmem [resolvable:$true] %s182_s28 }
  0x32   : > { %s1946_s29 = scalar_lea.sflag [#allocation3], %s170_s10  ;;  %s1731_s30 = scalar_lea.hbm %s1942_s26, 384 }
  0x33   : > { %p1732_p7 = scmp.ne.s32.totalorder %s1942_s26, %s1731_s30  ;;  %p1733_p0 = pneg %p1932_p13 }
  0x34   : > { %s1736_s6 = scalar_lea.hbm %s2775_s0, 768  ;;  %p1737_p6 = scmp.lt.u32.totalorder %s1942_s26, %s2775_s0 }
  0x35   : > { %p1734_p2 = pnand %p1733_p0, %p1732_p7  ;;  %p1738_p8 = scmp.lt.u32.totalorder %s1736_s6, %s1731_s30 }
  0x36   : > { %p1740_p9 = scmp.lt.u32.totalorder %s1731_s30, %s1942_s26 }
  0x37   : > { %p1735_p3 = pneg %p1734_p2  ;;  %p1739_p10 = por %p1738_p8, %p1737_p6 }
  0x39   : > { %p1741_p11 = por %p1740_p9, %p1739_p10 }
  0x3b   : > { %p1742_p1 = pnand %p1741_p11, %p1735_p3 }
  0x3d   : > { %1745 = shalt.err (!%p1742_p1)
}
  0x3e   : > { %s1746_s10 = scalar_lea.vmem %s1944_s28, 384  ;;  %s1825_s11 = smov [#allocation2]  }
  0x3f   : > { %p1747_p4 = scmp.ne.s32.totalorder %s1944_s28, %s1746_s10  ;;  %s1751_s12 = sshll.u32 %s1825_s11, 4  ;;  %s1752_s12 = int_to_ptr.vmem [resolvable:$false] %s1751_s12 }
  0x40   : > { %s1753_s18 = scalar_lea.vmem %s1752_s12, 768  ;;  %p1754_p7 = scmp.lt.s32.totalorder %s1944_s28, %s1752_s12 }
  0x41   : > { %p1749_p5 = pnand %p1747_p4, %p1733_p0  ;;  %p1755_p2 = scmp.lt.s32.totalorder %s1753_s18, %s1746_s10 }
  0x43   : > { %p1750_p12 = pneg %p1749_p5  ;;  %p1756_p6 = por %p1755_p2, %p1754_p7 }
  0x45   : > { %p1757_p8 = pnand %p1756_p6, %p1750_p12 }
  0x47   : > { %1760 = shalt.err (!%p1757_p8)
}
  0x48   : > { %s1826_s23 = smov 64   ;;  %s1827_s25 = smov 4  }
  0x49   : > { %1641 = dma.hbm_to_vmem [thread:$0]  (!%p1932_p13), %s1942_s26, 384, %s1944_s28, %s1946_s29, %s1826_s23, %s1826_s23, %s1827_s25  }
  0x4a   : > { %p2788_p0 = scmp.ne.s32.totalorder %s2785_s24, 0 }
  0x4b   : > { %s196_s27 = sand.u32 (!%p2788_p0), 1, %s1803_s13   ;;  %p2789_p3 = scmp.ne.s32.totalorder (!%p2788_p0), %s2784_s20, 0 }
  0x4c   : > { %194 = sbr.rel (%p2788_p0) target bundleno = 343 (0x157), region = 32  ;;  %s197_s4 = scalar_lea.sflag (!%p2788_p0), [#allocation3], %s196_s27 }
  0x4d   : > { %s1620_s30 = smul.u32 (!%p2788_p0), 24, %s196_s27 }
  0x4f   : > { %s200_s5 = scalar_lea.vmem (!%p2788_p0), [#allocation2], %s1620_s30 }
  0x53   : > { %1786 = dma.done.wait (%p2789_p3), %s197_s4, 384  }
  0x54   : > { %1788 = vsyncadd (%p2789_p3), %s197_s4, 4294966912  ;;  %p2790_p10 = scmp.ne.s32.totalorder %s2783_s19, 0 }
  0x56   : > { %1790 = dma.done.wait (%p2790_p10), [#allocation4], 512  }
  0x57   : > { %1792 = vsyncadd (%p2790_p10), [#allocation4], 4294966784 }
  0x58   : > { %1794 = dma.done.wait (%p2790_p10), [#allocation7], 16  }
  0x59   : > { %1796 = vsyncadd (%p2790_p10), [#allocation7], 4294967280 }
  0x5a   : > { %213 = sfence }
  0x5b   : > { %v1605_v0 = vld [vmem:[%s200_s5] sm:$0xff]   ;;  %s257_s24 = sld [smem:[#allocation5]]  ;;  %v1616_v1 = vld [vmem:[%s200_s5 + $0x8] sm:$0xff]   ;;  %v1617_v2 = vld [vmem:[%s200_s5 + $0x10] sm:$0xff]   ;;  %s1467_s21 = sld [smem:[#allocation5 + $0x1]]  ;;  %vm279_vm0 = vcmask 130048  }
  0x5c   : > { %s1468_s20 = sld [smem:[#allocation5 + $0x2]]  ;;  %v1989_v3 = vunpack.c.l.bf16 %v1605_v0  ;;  %v1991_v4 = vunpack.c.h.bf16 %v1605_v0  ;;  %s1993_s26 = sld [smem:[#allocation6]]  ;;  %v1995_v5 = vunpack.c.l.bf16 %v1616_v1  ;;  %v1997_v6 = vunpack.c.h.bf16 %v1616_v1 }
  0x5d   : > { %s1469_s28 = sld [smem:[#allocation5 + $0x80]]  ;;  %v1999_v7 = vunpack.c.l.bf16 %v1617_v2  ;;  %v2001_v8 = vunpack.c.h.bf16 %v1617_v2  ;;  %s1470_s19 = sld [smem:[#allocation5 + $0x81]]  ;;  %vm770_vm1 = vcmask 1040384   ;;  %vm772_vm2 = vcmask 1041408  }
  0x5e   : > { %s2003_s29 = sld [smem:[#allocation5 + $0x82]]  ;;  %s2005_s6 = sld [smem:[#allocation6 + $0x1]]  ;;  %vm774_vm3 = vcmask 1042432   ;;  %vm776_vm4 = vcmask 1043456   ;;  %vm778_vm5 = vcmask 1044480   ;;  %vm780_vm6 = vcmask 1045504  }
  0x5f   : > { %s2007_s7 = sld [smem:[#allocation5 + $0x100]]  ;;  %s2011_s9 = sld [smem:[#allocation5 + $0x101]]  ;;  %vm782_vm7 = vcmask 1046528   ;;  %vm799_vm8 = vcmask 125952  }
  0x60   : > { %s2013_s10 = sld [smem:[#allocation5 + $0x102]]  ;;  %s2027_s12 = sld [smem:[#allocation5 + $0x180]] }
  0x61   : > { %v258_v9 = vstv %s257_s24  ;;  %v262_v12 = vstv %s1467_s21  ;;  %s2023_s11 = sld [smem:[#allocation6 + $0x2]]  ;;  %s2029_s18 = sld [smem:[#allocation5 + $0x181]] }
  0x62   : > { %v259_v10 = vmul.f32 %v1989_v3, %v258_v9  ;;  %v260_v11 = vmul.f32 %v1991_v4, %v258_v9  ;;  %v268_v13 = vstv %s1468_s20  ;;  %v263_v14 = vmul.f32 %v1995_v5, %v262_v12  ;;  %s2039_s23 = sld [smem:[#allocation5 + $0x182]]  ;;  %s2041_s25 = sld [smem:[#allocation6 + $0x3]] }
  0x63   : > { %v264_v15 = vmul.f32 %v1997_v6, %v262_v12  ;;  %v269_v16 = vmul.f32 %v1999_v7, %v268_v13  ;;  %v270_v17 = vmul.f32 %v2001_v8, %v268_v13  ;;  %v291_v18 = vstv %s1469_s28  ;;  %s2049_s27 = sld [smem:[#allocation5 + $0x200]]  ;;  %s2055_s30 = sld [smem:[#allocation5 + $0x201]] }
  0x64   : > { %v265_v19 = vadd.f32 %v263_v14, %v259_v10  ;;  %v292_v21 = vmul.f32 %v1989_v3, %v291_v18  ;;  %v293_v22 = vmul.f32 %v1991_v4, %v291_v18  ;;  %v274_v23 = vstv %s1993_s26  ;;  %s2061_s4 = sld [smem:[#allocation5 + $0x202]]  ;;  %s2071_s5 = sld [smem:[#allocation6 + $0x4]] }
  0x65   : > { %v266_v20 = vadd.f32 %v264_v15, %v260_v11  ;;  %v295_v24 = vstv %s1470_s19  ;;  %v301_v25 = vstv %s2003_s29  ;;  %v307_v32 = vstv %s2005_s6  ;;  %s2074_s24 = sld [smem:[#allocation5 + $0x280]]  ;;  %s2076_s21 = sld [smem:[#allocation5 + $0x281]] }
  0x66   : > { %v271_v26 = vadd.f32 %v269_v16, %v265_v19  ;;  %v296_v28 = vmul.f32 %v1995_v5, %v295_v24  ;;  %v297_v29 = vmul.f32 %v1997_v6, %v295_v24  ;;  %v302_v30 = vmul.f32 %v1999_v7, %v301_v25  ;;  %s2083_s20 = sld [smem:[#allocation5 + $0x282]]  ;;  %s2091_s26 = sld [smem:[#allocation6 + $0x5]] }
  0x67   : > { %v272_v27 = vadd.f32 %v270_v17, %v266_v20  ;;  %v303_v31 = vmul.f32 %v2001_v8, %v301_v25  ;;  %v323_v33 = vstv %s2007_s7  ;;  %v327_v40 = vstv %s2011_s9  ;;  %s2094_s28 = sld [smem:[#allocation5 + $0x300]]  ;;  %s2098_s19 = sld [smem:[#allocation5 + $0x301]] }
  0x68   : > { %v275_v34 = vadd.f32 %v274_v23, %v271_v26  ;;  %v298_v36 = vadd.f32 %v296_v28, %v292_v21  ;;  %v299_v37 = vadd.f32 %v297_v29, %v293_v22  ;;  %v324_v38 = vmul.f32 %v1989_v3, %v323_v33  ;;  %s2105_s29 = sld [smem:[#allocation5 + $0x302]]  ;;  %s2107_s6 = sld [smem:[#allocation6 + $0x6]] }
  0x69   : > { %v276_v35 = vadd.f32 %v274_v23, %v272_v27  ;;  %v325_v39 = vmul.f32 %v1991_v4, %v323_v33  ;;  %v333_v41 = vstv %s2013_s10  ;;  %v328_v46 = vmul.f32 %v1995_v5, %v327_v40  ;;  %s2114_s7 = sld [smem:[#allocation5 + $0x380]]  ;;  %s2121_s9 = sld [smem:[#allocation5 + $0x381]] }
  0x6a   : > { %v277_v42 = vmax.f32 %v275_v34, 0.0  ;;  %v304_v44 = vadd.f32 %v302_v30, %v298_v36  ;;  %v305_v45 = vadd.f32 %v303_v31, %v299_v37  ;;  %v329_v47 = vmul.f32 %v1997_v6, %v327_v40  ;;  %s2123_s10 = sld [smem:[#allocation5 + $0x382]]  ;;  %p235_p13 = scmp.lt.s32.totalorder %s1811_s15, 1 }
  0x6b   : > { %v278_v43 = vmax.f32 %v276_v35, 0.0  ;;  %v334_v48 = vmul.f32 %v1999_v7, %v333_v41  ;;  %v335_v49 = vmul.f32 %v2001_v8, %v333_v41  ;;  %v330_v55 = vadd.f32 %v328_v46, %v324_v38 }
  0x6c   : > { %v280_v50 = vsel %vm279_vm0, %v277_v42, 0.0  ;;  %v308_v52 = vadd.f32 %v307_v32, %v304_v44  ;;  %v309_v53 = vadd.f32 %v307_v32, %v305_v45  ;;  %v331_v56 = vadd.f32 %v329_v47, %v325_v39  ;;  %s2799_s15 = smov (!%p235_p13, %s1811_s15), 1 }
  0x6d   : > { %v281_v51 = vsel %vm279_vm0, %v278_v43, 0.0  ;;  %v339_v57 = vstv %s2023_s11  ;;  %v355_v60 = vstv %s2027_s12  ;;  %v359_v61 = vstv %s2029_s18  ;;  %s2132_s11 = sld [smem:[#allocation6 + $0x7]]  ;;  %s2134_s12 = sld [smem:[#allocation5 + $0x400]] }
  0x6e   : > { %v282_v54 = vadd.f32 %v281_v51, %v280_v50  ;;  %v310_v58 = vmax.f32 %v308_v52, 0.0  ;;  %v311_v59 = vmax.f32 %v309_v53, 0.0  ;;  %v336_v63 = vadd.f32 %v334_v48, %v330_v55  ;;  %s2144_s18 = sld [smem:[#allocation5 + $0x401]] }
  0x6f   : > { %v337_v0 = vadd.f32 %v335_v49, %v331_v56  ;;  %v356_v1 = vmul.f32 %v1989_v3, %v355_v60  ;;  %v357_v10 = vmul.f32 %v1991_v4, %v355_v60  ;;  %v360_v11 = vmul.f32 %v1995_v5, %v359_v61 }
  0x70   : > { %v283_v62 = vrot.slane %v282_v54, 4  ;;  %v312_v2 = vsel %vm279_vm0, %v310_v58, 0.0  ;;  %v313_v9 = vsel %vm279_vm0, %v311_v59, 0.0  ;;  %v340_v14 = vadd.f32 %v339_v57, %v336_v63 }
  0x71   : > { %v314_v13 = vadd.f32 %v313_v9, %v312_v2  ;;  %v341_v15 = vadd.f32 %v339_v57, %v337_v0  ;;  %v361_v16 = vmul.f32 %v1997_v6, %v359_v61  ;;  %v362_v17 = vadd.f32 %v360_v11, %v356_v1 }
  0x72   : > { %v284_v12 = vadd.f32 %v283_v62, %v282_v54  ;;  %v365_v18 = vstv %s2039_s23  ;;  %v371_v19 = vstv %s2041_s25  ;;  %v342_v22 = vmax.f32 %v340_v14, 0.0  ;;  %s2150_s23 = sld [smem:[#allocation5 + $0x402]]  ;;  %s2152_s25 = sld [smem:[#allocation6 + $0x8]] }
  0x73   : > { %v315_v21 = vrot.slane %v314_v13, 4  ;;  %v343_v23 = vmax.f32 %v341_v15, 0.0  ;;  %v363_v24 = vadd.f32 %v361_v16, %v357_v10  ;;  %v366_v25 = vmul.f32 %v1999_v7, %v365_v18 }
  0x74   : > { %v285_v20 = vrot.slane %v284_v12, 2  ;;  %v367_v26 = vmul.f32 %v2001_v8, %v365_v18  ;;  %v387_v27 = vstv %s2049_s27  ;;  %v344_v30 = vsel %vm279_vm0, %v342_v22, 0.0  ;;  %s2159_s27 = sld [smem:[#allocation5 + $0x480]] }
  0x75   : > { %v316_v29 = vadd.f32 %v315_v21, %v314_v13  ;;  %v345_v31 = vsel %vm279_vm0, %v343_v23, 0.0  ;;  %v368_v33 = vadd.f32 %v366_v25, %v362_v17  ;;  %v388_v35 = vmul.f32 %v1989_v3, %v387_v27 }
  0x76   : > { %v286_v28 = vadd.f32 %v285_v20, %v284_v12  ;;  %v346_v32 = vadd.f32 %v345_v31, %v344_v30  ;;  %v369_v34 = vadd.f32 %v367_v26, %v363_v24  ;;  %v389_v38 = vmul.f32 %v1991_v4, %v387_v27 }
  0x77   : > { %v317_v37 = vrot.slane %v316_v29, 2  ;;  %v391_v39 = vstv %s2055_s30  ;;  %v372_v41 = vadd.f32 %v371_v19, %v368_v33  ;;  %v397_v47 = vstv %s2061_s4  ;;  %s2161_s30 = sld [smem:[#allocation5 + $0x481]]  ;;  %s2172_s4 = sld [smem:[#allocation5 + $0x482]] }
  0x78   : > { %v287_v36 = vrot.slane %v286_v28, 1  ;;  %v347_v40 = vrot.slane %v346_v32, 4  ;;  %v373_v42 = vadd.f32 %v371_v19, %v369_v34  ;;  %v392_v43 = vmul.f32 %v1995_v5, %v391_v39 }
  0x79   : > { %v318_v45 = vadd.f32 %v317_v37, %v316_v29  ;;  %v393_v46 = vmul.f32 %v1997_v6, %v391_v39  ;;  %v374_v49 = vmax.f32 %v372_v41, 0.0  ;;  %v398_v55 = vmul.f32 %v1999_v7, %v397_v47 }
  0x7a   : > { %v288_v44 = vadd.f32 %v287_v36, %v286_v28  ;;  %v348_v48 = vadd.f32 %v347_v40, %v346_v32  ;;  %v375_v50 = vmax.f32 %v373_v42, 0.0  ;;  %v394_v51 = vadd.f32 %v392_v43, %v388_v35 }
  0x7b   : > { %v319_v53 = vrot.slane %v318_v45, 1  ;;  %v395_v54 = vadd.f32 %v393_v46, %v389_v38  ;;  %v376_v57 = vsel %vm279_vm0, %v374_v49, 0.0  ;;  %v399_v59 = vmul.f32 %v2001_v8, %v397_v47 }
  0x7c   : > { %v2085_v52 = vmul.f32 0.0625, %v288_v44  ;;  %v349_v56 = vrot.slane %v348_v48, 2  ;;  %v377_v58 = vsel %vm279_vm0, %v375_v50, 0.0  ;;  %v400_v62 = vadd.f32 %v398_v55, %v394_v51 }
  0x7d   : > { %v320_v60 = vadd.f32 %v319_v53, %v318_v45  ;;  %v378_v61 = vadd.f32 %v377_v58, %v376_v57  ;;  %v403_v63 = vstv %s2071_s5  ;;  %v401_v1 = vadd.f32 %v399_v59, %v395_v54  ;;  %s2174_s5 = sld [smem:[#allocation6 + $0x9]] }
  0x7e   : > { %v350_v0 = vadd.f32 %v349_v56, %v348_v48  ;;  %v419_v2 = vstv %s2074_s24  ;;  %v423_v9 = vstv %s2076_s21  ;;  %v404_v12 = vadd.f32 %v403_v63, %v400_v62  ;;  %s2178_s24 = sld [smem:[#allocation5 + $0x500]]  ;;  %s2188_s21 = sld [smem:[#allocation5 + $0x501]] }
  0x7f   : > { %v2100_v10 = vmul.f32 0.0625, %v320_v60  ;;  %v379_v11 = vrot.slane %v378_v61, 4  ;;  %v420_v13 = vmul.f32 %v1989_v3, %v419_v2  ;;  %v405_v15 = vadd.f32 %v403_v63, %v401_v1 }
  0x80   : > { %v351_v14 = vrot.slane %v350_v0, 1  ;;  %v421_v16 = vmul.f32 %v1991_v4, %v419_v2  ;;  %v424_v17 = vmul.f32 %v1995_v5, %v423_v9  ;;  %v406_v19 = vmax.f32 %v404_v12, 0.0 }
  0x81   : > { %v380_v18 = vadd.f32 %v379_v11, %v378_v61  ;;  %v425_v20 = vmul.f32 %v1997_v6, %v423_v9  ;;  %v429_v21 = vstv %s2083_s20  ;;  %v407_v23 = vmax.f32 %v405_v15, 0.0  ;;  %s2190_s20 = sld [smem:[#allocation5 + $0x502]] }
  0x82   : > { %v352_v22 = vadd.f32 %v351_v14, %v350_v0  ;;  %v426_v24 = vadd.f32 %v424_v17, %v420_v13  ;;  %v430_v25 = vmul.f32 %v1999_v7, %v429_v21  ;;  %v408_v27 = vsel %vm279_vm0, %v406_v19, 0.0 }
  0x83   : > { %v381_v26 = vrot.slane %v380_v18, 2  ;;  %v427_v28 = vadd.f32 %v425_v20, %v421_v16  ;;  %v431_v29 = vmul.f32 %v2001_v8, %v429_v21  ;;  %v409_v31 = vsel %vm279_vm0, %v407_v23, 0.0 }
  0x84   : > { %v2116_v30 = vmul.f32 0.0625, %v352_v22  ;;  %v432_v32 = vadd.f32 %v430_v25, %v426_v24  ;;  %v435_v33 = vstv %s2091_s26  ;;  %v410_v35 = vadd.f32 %v409_v31, %v408_v27  ;;  %s2198_s26 = sld [smem:[#allocation6 + $0xa]] }
  0x85   : > { %v382_v34 = vadd.f32 %v381_v26, %v380_v18  ;;  %v433_v36 = vadd.f32 %v431_v29, %v427_v28  ;;  %v451_v37 = vstv %s2094_s28  ;;  %v455_v41 = vstv %s2098_s19  ;;  %s2200_s28 = sld [smem:[#allocation5 + $0x580]]  ;;  %s2210_s19 = sld [smem:[#allocation5 + $0x581]] }
  0x86   : > { %v436_v38 = vadd.f32 %v435_v33, %v432_v32  ;;  %v452_v39 = vmul.f32 %v1989_v3, %v451_v37  ;;  %v453_v40 = vmul.f32 %v1991_v4, %v451_v37  ;;  %v411_v43 = vrot.slane %v410_v35, 4 }
  0x87   : > { %v383_v42 = vrot.slane %v382_v34, 1  ;;  %v437_v44 = vadd.f32 %v435_v33, %v433_v36  ;;  %v456_v45 = vmul.f32 %v1995_v5, %v455_v41  ;;  %v457_v47 = vmul.f32 %v1997_v6, %v455_v41 }
  0x88   : > { %v438_v46 = vmax.f32 %v436_v38, 0.0  ;;  %v461_v48 = vstv %s2105_s29  ;;  %v467_v49 = vstv %s2107_s6  ;;  %v412_v51 = vadd.f32 %v411_v43, %v410_v35  ;;  %s2216_s29 = sld [smem:[#allocation5 + $0x582]]  ;;  %s2218_s6 = sld [smem:[#allocation6 + $0xb]] }
  0x89   : > { %v384_v50 = vadd.f32 %v383_v42, %v382_v34  ;;  %v439_v53 = vmax.f32 %v437_v44, 0.0  ;;  %v458_v54 = vadd.f32 %v456_v45, %v452_v39  ;;  %v459_v56 = vadd.f32 %v457_v47, %v453_v40 }
  0x8a   : > { %v440_v55 = vsel %vm279_vm0, %v438_v46, 0.0  ;;  %v462_v57 = vmul.f32 %v1999_v7, %v461_v48  ;;  %v463_v58 = vmul.f32 %v2001_v8, %v461_v48  ;;  %v413_v60 = vrot.slane %v412_v51, 2 }
  0x8b   : > { %v2139_v59 = vmul.f32 0.0625, %v384_v50  ;;  %v441_v61 = vsel %vm279_vm0, %v439_v53, 0.0  ;;  %v483_v62 = vstv %s2114_s7  ;;  %v487_v12 = vstv %s2121_s9  ;;  %s2225_s7 = sld [smem:[#allocation5 + $0x600]]  ;;  %s2227_s9 = sld [smem:[#allocation5 + $0x601]] }
  0x8c   : > { %v442_v63 = vadd.f32 %v441_v61, %v440_v55  ;;  %v464_v0 = vadd.f32 %v462_v57, %v458_v54  ;;  %v465_v1 = vadd.f32 %v463_v58, %v459_v56  ;;  %v484_v2 = vmul.f32 %v1989_v3, %v483_v62 }
  0x8d   : > { %v414_v9 = vadd.f32 %v413_v60, %v412_v51  ;;  %v485_v11 = vmul.f32 %v1991_v4, %v483_v62  ;;  %v493_v13 = vstv %s2123_s10  ;;  %v488_v17 = vmul.f32 %v1995_v5, %v487_v12  ;;  %s2238_s10 = sld [smem:[#allocation5 + $0x602]] }
  0x8e   : > { %v443_v14 = vrot.slane %v442_v63, 4  ;;  %v468_v15 = vadd.f32 %v467_v49, %v464_v0  ;;  %v469_v16 = vadd.f32 %v467_v49, %v465_v1  ;;  %v489_v19 = vmul.f32 %v1997_v6, %v487_v12 }
  0x8f   : > { %v415_v18 = vrot.slane %v414_v9, 1  ;;  %v494_v20 = vmul.f32 %v1999_v7, %v493_v13  ;;  %v495_v21 = vmul.f32 %v2001_v8, %v493_v13  ;;  %v490_v25 = vadd.f32 %v488_v17, %v484_v2 }
  0x90   : > { %v444_v22 = vadd.f32 %v443_v14, %v442_v63  ;;  %v470_v23 = vmax.f32 %v468_v15, 0.0  ;;  %v471_v24 = vmax.f32 %v469_v16, 0.0  ;;  %v491_v27 = vadd.f32 %v489_v19, %v485_v11 }
  0x91   : > { %v416_v26 = vadd.f32 %v415_v18, %v414_v9  ;;  %v499_v28 = vstv %s2132_s11  ;;  %v515_v29 = vstv %s2134_s12  ;;  %v496_v34 = vadd.f32 %v494_v20, %v490_v25  ;;  %s2240_s11 = sld [smem:[#allocation6 + $0xc]]  ;;  %s2244_s12 = sld [smem:[#allocation5 + $0x680]] }
  0x92   : > { %v445_v31 = vrot.slane %v444_v22, 2  ;;  %v472_v32 = vsel %vm279_vm0, %v470_v23, 0.0  ;;  %v473_v33 = vsel %vm279_vm0, %v471_v24, 0.0  ;;  %v497_v37 = vadd.f32 %v495_v21, %v491_v27 }
  0x93   : > { %v2165_v35 = vmul.f32 0.0625, %v416_v26  ;;  %v474_v36 = vadd.f32 %v473_v33, %v472_v32  ;;  %v516_v38 = vmul.f32 %v1989_v3, %v515_v29  ;;  %v500_v40 = vadd.f32 %v499_v28, %v496_v34 }
  0x94   : > { %v446_v39 = vadd.f32 %v445_v31, %v444_v22  ;;  %v517_v41 = vmul.f32 %v1991_v4, %v515_v29  ;;  %v519_v42 = vstv %s2144_s18  ;;  %v501_v44 = vadd.f32 %v499_v28, %v497_v37  ;;  %s2254_s18 = sld [smem:[#allocation5 + $0x681]] }
  0x95   : > { %v475_v43 = vrot.slane %v474_v36, 4  ;;  %v520_v45 = vmul.f32 %v1995_v5, %v519_v42  ;;  %v521_v46 = vmul.f32 %v1997_v6, %v519_v42  ;;  %v502_v48 = vmax.f32 %v500_v40, 0.0 }
  0x96   : > { %v447_v47 = vrot.slane %v446_v39, 1  ;;  %v525_v49 = vstv %s2150_s23  ;;  %v531_v50 = vstv %s2152_s25  ;;  %v503_v53 = vmax.f32 %v501_v44, 0.0  ;;  %s2256_s23 = sld [smem:[#allocation5 + $0x682]]  ;;  %s2264_s25 = sld [smem:[#allocation6 + $0xd]] }
  0x97   : > { %v476_v51 = vadd.f32 %v475_v43, %v474_v36  ;;  %v522_v54 = vadd.f32 %v520_v45, %v516_v38  ;;  %v523_v55 = vadd.f32 %v521_v46, %v517_v41  ;;  %v504_v57 = vsel %vm279_vm0, %v502_v48, 0.0 }
  0x98   : > { %v448_v56 = vadd.f32 %v447_v47, %v446_v39  ;;  %v526_v58 = vmul.f32 %v1999_v7, %v525_v49  ;;  %v527_v60 = vmul.f32 %v2001_v8, %v525_v49  ;;  %v505_v62 = vsel %vm279_vm0, %v503_v53, 0.0 }
  0x99   : > { %v477_v61 = vrot.slane %v476_v51, 2  ;;  %v547_v63 = vstv %s2159_s27  ;;  %v551_v0 = vstv %s2161_s30  ;;  %v506_v2 = vadd.f32 %v505_v62, %v504_v57  ;;  %s2266_s27 = sld [smem:[#allocation5 + $0x700]]  ;;  %s2276_s30 = sld [smem:[#allocation5 + $0x701]] }
  0x9a   : > { %v2186_v1 = vmul.f32 0.0625, %v448_v56  ;;  %v528_v9 = vadd.f32 %v526_v58, %v522_v54  ;;  %v529_v11 = vadd.f32 %v527_v60, %v523_v55  ;;  %v548_v13 = vmul.f32 %v1989_v3, %v547_v63 }
  0x9b   : > { %v478_v12 = vadd.f32 %v477_v61, %v476_v51  ;;  %v549_v14 = vmul.f32 %v1991_v4, %v547_v63  ;;  %v552_v15 = vmul.f32 %v1995_v5, %v551_v0  ;;  %v507_v16 = vrot.slane %v506_v2, 4 }
  0x9c   : > { %v532_v17 = vadd.f32 %v531_v50, %v528_v9  ;;  %v533_v18 = vadd.f32 %v531_v50, %v529_v11  ;;  %v553_v19 = vmul.f32 %v1997_v6, %v551_v0  ;;  %v557_v22 = vstv %s2172_s4  ;;  %s2282_s4 = sld [smem:[#allocation5 + $0x702]] }
  0x9d   : > { %v479_v20 = vrot.slane %v478_v12, 1  ;;  %v554_v21 = vadd.f32 %v552_v15, %v548_v13  ;;  %v563_v23 = vstv %s2174_s5  ;;  %v508_v24 = vadd.f32 %v507_v16, %v506_v2  ;;  %s2284_s5 = sld [smem:[#allocation6 + $0xe]] }
  0x9e   : > { %v534_v25 = vmax.f32 %v532_v17, 0.0  ;;  %v535_v26 = vmax.f32 %v533_v18, 0.0  ;;  %v555_v27 = vadd.f32 %v553_v19, %v549_v14  ;;  %v558_v29 = vmul.f32 %v1999_v7, %v557_v22 }
  0x9f   : > { %v480_v28 = vadd.f32 %v479_v20, %v478_v12  ;;  %v559_v31 = vmul.f32 %v2001_v8, %v557_v22  ;;  %v579_v32 = vstv %s2178_s24  ;;  %v509_v33 = vrot.slane %v508_v24, 2  ;;  %s2291_s24 = sld [smem:[#allocation5 + $0x780]] }
  0xa0   : > { %v536_v34 = vsel %vm279_vm0, %v534_v25, 0.0  ;;  %v537_v36 = vsel %vm279_vm0, %v535_v26, 0.0  ;;  %v580_v37 = vmul.f32 %v1989_v3, %v579_v32  ;;  %v560_v40 = vadd.f32 %v558_v29, %v554_v21 }
  0xa1   : > { %v2208_v38 = vmul.f32 0.0625, %v480_v28  ;;  %v538_v39 = vadd.f32 %v537_v36, %v536_v34  ;;  %v561_v41 = vadd.f32 %v559_v31, %v555_v27  ;;  %v510_v42 = vadd.f32 %v509_v33, %v508_v24 }
  0xa2   : > { %v581_v43 = vmul.f32 %v1991_v4, %v579_v32  ;;  %v583_v44 = vstv %s2188_s21  ;;  %v589_v45 = vstv %s2190_s20  ;;  %v564_v47 = vadd.f32 %v563_v23, %v560_v40  ;;  %s2293_s21 = sld [smem:[#allocation5 + $0x781]]  ;;  %s2304_s20 = sld [smem:[#allocation5 + $0x782]] }
  0xa3   : > { %v539_v46 = vrot.slane %v538_v39, 4  ;;  %v565_v48 = vadd.f32 %v563_v23, %v561_v41  ;;  %v584_v49 = vmul.f32 %v1995_v5, %v583_v44  ;;  %v511_v50 = vrot.slane %v510_v42, 1 }
  0xa4   : > { %v585_v51 = vmul.f32 %v1997_v6, %v583_v44  ;;  %v590_v53 = vmul.f32 %v1999_v7, %v589_v45  ;;  %v591_v54 = vmul.f32 %v2001_v8, %v589_v45  ;;  %v566_v56 = vmax.f32 %v564_v47, 0.0 }
  0xa5   : > { %v540_v55 = vadd.f32 %v539_v46, %v538_v39  ;;  %v567_v57 = vmax.f32 %v565_v48, 0.0  ;;  %v586_v58 = vadd.f32 %v584_v49, %v580_v37  ;;  %v512_v60 = vadd.f32 %v511_v50, %v510_v42 }
  0xa6   : > { %v587_v61 = vadd.f32 %v585_v51, %v581_v43  ;;  %v595_v62 = vstv %s2198_s26  ;;  %v611_v63 = vstv %s2200_s28  ;;  %v568_v2 = vsel %vm279_vm0, %v566_v56, 0.0  ;;  %s2306_s26 = sld [smem:[#allocation6 + $0xf]]  ;;  %s2319_s28 = sld [smem:[#allocation5 + $0x800]] }
  0xa7   : > { %v541_v0 = vrot.slane %v540_v55, 2  ;;  %v569_v9 = vsel %vm279_vm0, %v567_v57, 0.0  ;;  %v592_v11 = vadd.f32 %v590_v53, %v586_v58  ;;  %v2231_v12 = vmul.f32 0.0625, %v512_v60 }
  0xa8   : > { %v570_v13 = vadd.f32 %v569_v9, %v568_v2  ;;  %v593_v14 = vadd.f32 %v591_v54, %v587_v61  ;;  %v612_v15 = vmul.f32 %v1989_v3, %v611_v63  ;;  %v613_v18 = vmul.f32 %v1991_v4, %v611_v63 }
  0xa9   : > { %v542_v16 = vadd.f32 %v541_v0, %v540_v55  ;;  %v596_v17 = vadd.f32 %v595_v62, %v592_v11  ;;  %v615_v19 = vstv %s2210_s19  ;;  %v621_v26 = vstv %s2216_s29  ;;  %s2341_s19 = sld [smem:[#allocation5 + $0x801]]  ;;  %s2343_s29 = sld [smem:[#allocation5 + $0x802]] }
  0xaa   : > { %v571_v20 = vrot.slane %v570_v13, 4  ;;  %v597_v21 = vadd.f32 %v595_v62, %v593_v14  ;;  %v616_v22 = vmul.f32 %v1995_v5, %v615_v19  ;;  %v617_v23 = vmul.f32 %v1997_v6, %v615_v19 }
  0xab   : > { %v543_v24 = vrot.slane %v542_v16, 1  ;;  %v598_v25 = vmax.f32 %v596_v17, 0.0  ;;  %v627_v27 = vstv %s2218_s6  ;;  %v622_v36 = vmul.f32 %v1999_v7, %v621_v26  ;;  %s1599_s6 = sshll.u32 %s2799_s15, 4  ;;  %s2363_s15 = sld [smem:[#allocation5 + $0x881]] }
  0xac   : > { %v572_v28 = vadd.f32 %v571_v20, %v570_v13  ;;  %v599_v29 = vmax.f32 %v597_v21, 0.0  ;;  %v618_v31 = vadd.f32 %v616_v22, %v612_v15  ;;  %v619_v32 = vadd.f32 %v617_v23, %v613_v18 }
  0xad   : > { %v544_v33 = vadd.f32 %v543_v24, %v542_v16  ;;  %v600_v34 = vsel %vm279_vm0, %v598_v25, 0.0  ;;  %v623_v37 = vmul.f32 %v2001_v8, %v621_v26  ;;  %v643_v41 = vstv %s2225_s7  ;;  %s2354_s7 = sld [smem:[#allocation6 + $0x10]] }
  0xae   : > { %v573_v39 = vrot.slane %v572_v28, 2  ;;  %v601_v40 = vsel %vm279_vm0, %v599_v29, 0.0  ;;  %v647_v42 = vstv %s2227_s9  ;;  %v624_v45 = vadd.f32 %v622_v36, %v618_v31  ;;  %s2356_s9 = sld [smem:[#allocation5 + $0x880]] }
  0xaf   : > { %v2252_v43 = vmul.f32 0.0625, %v544_v33  ;;  %v602_v44 = vadd.f32 %v601_v40, %v600_v34  ;;  %v625_v46 = vadd.f32 %v623_v37, %v619_v32  ;;  %v644_v48 = vmul.f32 %v1989_v3, %v643_v41 }
  0xb0   : > { %v574_v47 = vadd.f32 %v573_v39, %v572_v28  ;;  %v645_v49 = vmul.f32 %v1991_v4, %v643_v41  ;;  %v648_v50 = vmul.f32 %v1995_v5, %v647_v42  ;;  %v628_v53 = vadd.f32 %v627_v27, %v624_v45 }
  0xb1   : > { %v603_v51 = vrot.slane %v602_v44, 4  ;;  %v629_v54 = vadd.f32 %v627_v27, %v625_v46  ;;  %v649_v55 = vmul.f32 %v1997_v6, %v647_v42  ;;  %v653_v58 = vstv %s2238_s10  ;;  %s2365_s10 = sld [smem:[#allocation5 + $0x882]] }
  0xb2   : > { %v575_v56 = vrot.slane %v574_v47, 1  ;;  %v650_v57 = vadd.f32 %v648_v50, %v644_v48  ;;  %v659_v60 = vstv %s2240_s11  ;;  %v630_v62 = vmax.f32 %v628_v53, 0.0  ;;  %s2488_s11 = sld [smem:[#allocation5 + $0xb01]] }
  0xb3   : > { %v604_v61 = vadd.f32 %v603_v51, %v602_v44  ;;  %v631_v63 = vmax.f32 %v629_v54, 0.0  ;;  %v651_v0 = vadd.f32 %v649_v55, %v645_v49  ;;  %v654_v9 = vmul.f32 %v1999_v7, %v653_v58 }
  0xb4   : > { %v576_v2 = vadd.f32 %v575_v56, %v574_v47  ;;  %v655_v11 = vmul.f32 %v2001_v8, %v653_v58  ;;  %v675_v13 = vstv %s2244_s12  ;;  %v632_v15 = vsel %vm279_vm0, %v630_v62, 0.0  ;;  %s2490_s12 = sld [smem:[#allocation5 + $0xb02]] }
  0xb5   : > { %v605_v14 = vrot.slane %v604_v61, 2  ;;  %v633_v16 = vsel %vm279_vm0, %v631_v63, 0.0  ;;  %v676_v17 = vmul.f32 %v1989_v3, %v675_v13  ;;  %v656_v20 = vadd.f32 %v654_v9, %v650_v57 }
  0xb6   : > { %v2274_v18 = vmul.f32 0.0625, %v576_v2  ;;  %v634_v19 = vadd.f32 %v633_v16, %v632_v15  ;;  %v657_v21 = vadd.f32 %v655_v11, %v651_v0  ;;  %v677_v23 = vmul.f32 %v1991_v4, %v675_v13 }
  0xb7   : > { %v606_v22 = vadd.f32 %v605_v14, %v604_v61  ;;  %v679_v24 = vstv %s2254_s18  ;;  %v685_v25 = vstv %s2256_s23  ;;  %v660_v27 = vadd.f32 %v659_v60, %v656_v20  ;;  %s2377_s18 = scalar_lea.vmem %s2778_s3, %s1599_s6  ;;  %s2386_s23 = sld [smem:[#allocation6 + $0x11]] }
  0xb8   : > { %v635_v26 = vrot.slane %v634_v19, 4  ;;  %v661_v28 = vadd.f32 %v659_v60, %v657_v21  ;;  %v680_v29 = vmul.f32 %v1995_v5, %v679_v24  ;;  %v681_v32 = vmul.f32 %v1997_v6, %v679_v24  ;;  %s2459_s6 = sld [smem:[#allocation5 + $0xa80]] }
  0xb9   : > { %v607_v31 = vrot.slane %v606_v22, 1  ;;  %v686_v33 = vmul.f32 %v1999_v7, %v685_v25  ;;  %v687_v34 = vmul.f32 %v2001_v8, %v685_v25  ;;  %v662_v37 = vmax.f32 %v660_v27, 0.0 }
  0xba   : > { %v636_v36 = vadd.f32 %v635_v26, %v634_v19  ;;  %v663_v39 = vmax.f32 %v661_v28, 0.0  ;;  %v682_v40 = vadd.f32 %v680_v29, %v676_v17  ;;  %v683_v42 = vadd.f32 %v681_v32, %v677_v23 }
  0xbb   : > { %v608_v41 = vadd.f32 %v607_v31, %v606_v22  ;;  %v691_v44 = vstv %s2264_s25  ;;  %v707_v45 = vstv %s2266_s27  ;;  %v664_v47 = vsel %vm279_vm0, %v662_v37, 0.0  ;;  %s2393_s25 = sld [smem:[#allocation5 + $0x900]]  ;;  %s2399_s27 = sld [smem:[#allocation5 + $0x901]] }
  0xbc   : > { %v637_v46 = vrot.slane %v636_v36, 2  ;;  %v665_v48 = vsel %vm279_vm0, %v663_v39, 0.0  ;;  %v688_v49 = vadd.f32 %v686_v33, %v682_v40  ;;  %v689_v53 = vadd.f32 %v687_v34, %v683_v42 }
  0xbd   : > { %v2297_v50 = vmul.f32 0.0625, %v608_v41  ;;  %v666_v51 = vadd.f32 %v665_v48, %v664_v47  ;;  %v708_v54 = vmul.f32 %v1989_v3, %v707_v45  ;;  %v709_v57 = vmul.f32 %v1991_v4, %v707_v45 }
  0xbe   : > { %v638_v55 = vadd.f32 %v637_v46, %v636_v36  ;;  %v692_v56 = vadd.f32 %v691_v44, %v688_v49  ;;  %v711_v58 = vstv %s2276_s30  ;;  %v693_v61 = vadd.f32 %v691_v44, %v689_v53  ;;  %s2401_s30 = sld [smem:[#allocation5 + $0x902]] }
  0xbf   : > { %v667_v60 = vrot.slane %v666_v51, 4  ;;  %v712_v62 = vmul.f32 %v1995_v5, %v711_v58  ;;  %v713_v63 = vmul.f32 %v1997_v6, %v711_v58  ;;  %v717_v9 = vstv %s2282_s4  ;;  %s2404_s4 = sld [smem:[#allocation6 + $0x12]] }
  0xc0   : > { %v639_v0 = vrot.slane %v638_v55, 1  ;;  %v694_v2 = vmax.f32 %v692_v56, 0.0  ;;  %v723_v11 = vstv %s2284_s5  ;;  %v695_v14 = vmax.f32 %v693_v61, 0.0  ;;  %s2406_s5 = sld [smem:[#allocation5 + $0x980]] }
  0xc1   : > { %v668_v13 = vadd.f32 %v667_v60, %v666_v51  ;;  %v714_v15 = vadd.f32 %v712_v62, %v708_v54  ;;  %v715_v16 = vadd.f32 %v713_v63, %v709_v57  ;;  %v718_v20 = vmul.f32 %v1999_v7, %v717_v9 }
  0xc2   : > { %v640_v17 = vadd.f32 %v639_v0, %v638_v55  ;;  %v696_v19 = vsel %vm279_vm0, %v694_v2, 0.0  ;;  %v719_v21 = vmul.f32 %v2001_v8, %v717_v9  ;;  %v697_v23 = vsel %vm279_vm0, %v695_v14, 0.0 }
  0xc3   : > { %v669_v22 = vrot.slane %v668_v13, 2  ;;  %v739_v24 = vstv %s2291_s24  ;;  %v743_v25 = vstv %s2293_s21  ;;  %v698_v27 = vadd.f32 %v697_v23, %v696_v19  ;;  %s2416_s24 = sld [smem:[#allocation5 + $0x981]]  ;;  %s2422_s21 = sld [smem:[#allocation5 + $0x982]] }
  0xc4   : > { %v2317_v26 = vmul.f32 0.0625, %v640_v17  ;;  %v720_v28 = vadd.f32 %v718_v20, %v714_v15  ;;  %v721_v29 = vadd.f32 %v719_v21, %v715_v16  ;;  %v740_v32 = vmul.f32 %v1989_v3, %v739_v24 }
  0xc5   : > { %v670_v31 = vadd.f32 %v669_v22, %v668_v13  ;;  %v741_v33 = vmul.f32 %v1991_v4, %v739_v24  ;;  %v744_v34 = vmul.f32 %v1995_v5, %v743_v25  ;;  %v699_v36 = vrot.slane %v698_v27, 4 }
  0xc6   : > { %v724_v37 = vadd.f32 %v723_v11, %v720_v28  ;;  %v725_v39 = vadd.f32 %v723_v11, %v721_v29  ;;  %v745_v40 = vmul.f32 %v1997_v6, %v743_v25  ;;  %v749_v44 = vstv %s2304_s20  ;;  %s2432_s20 = sld [smem:[#allocation6 + $0x13]] }
  0xc7   : > { %v671_v41 = vrot.slane %v670_v31, 1  ;;  %v746_v42 = vadd.f32 %v744_v34, %v740_v32  ;;  %v755_v45 = vstv %s2306_s26  ;;  %v700_v46 = vadd.f32 %v699_v36, %v698_v27  ;;  %s2434_s26 = sld [smem:[#allocation5 + $0xa00]] }
  0xc8   : > { %v726_v47 = vmax.f32 %v724_v37, 0.0  ;;  %v727_v48 = vmax.f32 %v725_v39, 0.0  ;;  %v747_v49 = vadd.f32 %v745_v40, %v741_v33  ;;  %v750_v53 = vmul.f32 %v1999_v7, %v749_v44 }
  0xc9   : > { %v672_v51 = vadd.f32 %v671_v41, %v670_v31  ;;  %v751_v54 = vmul.f32 %v2001_v8, %v749_v44  ;;  %v771_v55 = vsel %vm770_vm1, %v2085_v52, %v2100_v10  ;;  %v701_v56 = vrot.slane %v700_v46, 2 }
  0xca   : > { %v728_v57 = vsel %vm279_vm0, %v726_v47, 0.0  ;;  %v729_v58 = vsel %vm279_vm0, %v727_v48, 0.0  ;;  %v773_v60 = vsel %vm772_vm2, %v771_v55, %v2116_v30  ;;  %v752_v63 = vadd.f32 %v750_v53, %v746_v42 }
  0xcb   : > { %v673_v61 = vmul.f32 0.0625, %v672_v51  ;;  %v730_v62 = vadd.f32 %v729_v58, %v728_v57  ;;  %v753_v0 = vadd.f32 %v751_v54, %v747_v49  ;;  %v702_v52 = vadd.f32 %v701_v56, %v700_v46 }
  0xcc   : > { %v775_v10 = vsel %vm774_vm3, %v773_v60, %v2139_v59  ;;  %v784_v2 = vsel %vm770_vm1, %v2252_v43, %v2274_v18  ;;  %v803_v9 = vstv %s2319_s28  ;;  %v756_v30 = vadd.f32 %v755_v45, %v752_v63  ;;  %s2445_s28 = sld [smem:[#allocation5 + $0xa01]] }
  0xcd   : > { %v731_v11 = vrot.slane %v730_v62, 4  ;;  %v757_v13 = vadd.f32 %v755_v45, %v753_v0  ;;  %v777_v14 = vsel %vm776_vm4, %v775_v10, %v2165_v35  ;;  %v703_v15 = vrot.slane %v702_v52, 1 }
  0xce   : > { %v779_v16 = vsel %vm778_vm5, %v777_v14, %v2186_v1  ;;  %v785_v59 = vsel %vm772_vm2, %v784_v2, %v2297_v50  ;;  %v804_v43 = vmul.f32 %v1989_v3, %v803_v9  ;;  %v758_v35 = vmax.f32 %v756_v30, 0.0 }
  0xcf   : > { %v732_v18 = vadd.f32 %v731_v11, %v730_v62  ;;  %v759_v17 = vmax.f32 %v757_v13, 0.0  ;;  %v781_v19 = vsel %vm780_vm6, %v779_v16, %v2208_v38  ;;  %v704_v20 = vadd.f32 %v703_v15, %v702_v52 }
  0xd0   : > { %v783_v1 = vsel %vm782_vm7, %v781_v19, %v2231_v12  ;;  %v786_v50 = vsel %vm774_vm3, %v785_v59, %v2317_v26  ;;  %v805_v21 = vmul.f32 %v1991_v4, %v803_v9  ;;  %v760_v23 = vsel %vm279_vm0, %v758_v35, 0.0 }
  0xd1   : > { %v733_v22 = vrot.slane %v732_v18, 2  ;;  %v761_v38 = vsel %vm279_vm0, %v759_v17, 0.0  ;;  %v787_v24 = vsel %vm776_vm4, %v786_v50, %v673_v61  ;;  %v705_v25 = vmul.f32 0.0625, %v704_v20 }
  0xd2   : > { %v762_v12 = vadd.f32 %v761_v38, %v760_v23  ;;  %v1600_v27 = vpack.c.bf16 %v783_v1, %v783_v1  ;;  %v807_v26 = vstv %s2341_s19  ;;  %v813_v32 = vstv %s2343_s29  ;;  %s2447_s19 = sld [smem:[#allocation5 + $0xa02]]  ;;  %s2457_s29 = sld [smem:[#allocation6 + $0x14]] }
  0xd3   : > { %v734_v28 = vadd.f32 %v733_v22, %v732_v18  ;;  %v808_v29 = vmul.f32 %v1995_v5, %v807_v26  ;;  %v809_v31 = vmul.f32 %v1997_v6, %v807_v26  ;;  %v788_v34 = vsel %vm778_vm5, %v787_v24, %v705_v25 }
  0xd4   : > { %v763_v33 = vrot.slane %v762_v12, 4  ;;  %800 = vst.msk [vmem:[%s2377_s18] sm:$0xf] %vm799_vm8, %v1600_v27  ;;  %v814_v36 = vmul.f32 %v1999_v7, %v813_v32  ;;  %v815_v37 = vmul.f32 %v2001_v8, %v813_v32  ;;  %v819_v42 = vstv %s2354_s7  ;;  %s2461_s7 = sld [smem:[#allocation5 + $0xa81]] }
  0xd5   : > { %v735_v39 = vrot.slane %v734_v28, 1  ;;  %v810_v40 = vadd.f32 %v808_v29, %v804_v43  ;;  %v811_v41 = vadd.f32 %v809_v31, %v805_v21  ;;  %v835_v45 = vstv %s2356_s9  ;;  %s2465_s9 = sld [smem:[#allocation5 + $0xa82]] }
  0xd6   : > { %v764_v44 = vadd.f32 %v763_v33, %v762_v12  ;;  %v839_v46 = vstv %s2363_s15  ;;  %v845_v47 = vstv %s2365_s10  ;;  %v836_v53 = vmul.f32 %v1989_v3, %v835_v45  ;;  %s2476_s15 = sld [smem:[#allocation6 + $0x15]]  ;;  %s2478_s10 = sld [smem:[#allocation5 + $0xb00]] }
  0xd7   : > { %v736_v48 = vadd.f32 %v735_v39, %v734_v28  ;;  %v816_v49 = vadd.f32 %v814_v36, %v810_v40  ;;  %v817_v51 = vadd.f32 %v815_v37, %v811_v41  ;;  %v837_v55 = vmul.f32 %v1991_v4, %v835_v45 }
  0xd8   : > { %v765_v54 = vrot.slane %v764_v44, 2  ;;  %v840_v56 = vmul.f32 %v1995_v5, %v839_v46  ;;  %v841_v57 = vmul.f32 %v1997_v6, %v839_v46  ;;  %v846_v62 = vmul.f32 %v1999_v7, %v845_v47 }
  0xd9   : > { %v737_v58 = vmul.f32 0.0625, %v736_v48  ;;  %v820_v60 = vadd.f32 %v819_v42, %v816_v49  ;;  %v821_v61 = vadd.f32 %v819_v42, %v817_v51  ;;  %v847_v10 = vmul.f32 %v2001_v8, %v845_v47 }
  0xda   : > { %v766_v63 = vadd.f32 %v765_v54, %v764_v44  ;;  %v842_v0 = vadd.f32 %v840_v56, %v836_v53  ;;  %v843_v52 = vadd.f32 %v841_v57, %v837_v55  ;;  %v851_v30 = vstv %s2386_s23  ;;  %s2500_s23 = sld [smem:[#allocation6 + $0x16]] }
  0xdb   : > { %v789_v2 = vsel %vm780_vm6, %v788_v34, %v737_v58  ;;  %v822_v9 = vmax.f32 %v820_v60, 0.0  ;;  %v823_v11 = vmax.f32 %v821_v61, 0.0  ;;  %v867_v16 = vstv %s2393_s25  ;;  %s2502_s25 = sld [smem:[#allocation5 + $0xb80]] }
  0xdc   : > { %v767_v13 = vrot.slane %v766_v63, 1  ;;  %v848_v14 = vadd.f32 %v846_v62, %v842_v0  ;;  %v849_v15 = vadd.f32 %v847_v10, %v843_v52  ;;  %v868_v18 = vmul.f32 %v1989_v3, %v867_v16 }
  0xdd   : > { %v824_v59 = vsel %vm279_vm0, %v822_v9, 0.0  ;;  %v825_v43 = vsel %vm279_vm0, %v823_v11, 0.0  ;;  %v869_v35 = vmul.f32 %v1991_v4, %v867_v16  ;;  %v871_v50 = vstv %s2399_s27  ;;  %s2507_s27 = sld [smem:[#allocation5 + $0xb81]] }
  0xde   : > { %v768_v17 = vadd.f32 %v767_v13, %v766_v63  ;;  %v826_v19 = vadd.f32 %v825_v43, %v824_v59  ;;  %v852_v20 = vadd.f32 %v851_v30, %v848_v14  ;;  %v853_v1 = vadd.f32 %v851_v30, %v849_v15 }
  0xdf   : > { %v877_v21 = vstv %s2401_s30  ;;  %v883_v22 = vstv %s2404_s4  ;;  %v899_v23 = vstv %s2406_s5  ;;  %v872_v27 = vmul.f32 %v1995_v5, %v871_v50  ;;  %s2509_s30 = sld [smem:[#allocation5 + $0xb82]]  ;;  %s2520_s4 = sld [smem:[#allocation6 + $0x17]] }
  0xe0   : > { %v769_v38 = vmul.f32 0.0625, %v768_v17  ;;  %v827_v24 = vrot.slane %v826_v19, 4  ;;  %v854_v25 = vmax.f32 %v852_v20, 0.0  ;;  %v855_v12 = vmax.f32 %v853_v1, 0.0  ;;  %s2522_s5 = sld [smem:[#allocation5 + $0xc00]] }
  0xe1   : > { %v873_v26 = vmul.f32 %v1997_v6, %v871_v50  ;;  %v878_v28 = vmul.f32 %v1999_v7, %v877_v21  ;;  %v879_v29 = vmul.f32 %v2001_v8, %v877_v21  ;;  %v874_v39 = vadd.f32 %v872_v27, %v868_v18 }
  0xe2   : > { %v790_v31 = vsel %vm782_vm7, %v789_v2, %v769_v38  ;;  %v828_v32 = vadd.f32 %v827_v24, %v826_v19  ;;  %v856_v33 = vsel %vm279_vm0, %v854_v25, 0.0  ;;  %v857_v34 = vsel %vm279_vm0, %v855_v12, 0.0 }
  0xe3   : > { %v1601_v36 = vpack.c.bf16 %v790_v31, %v790_v31  ;;  %v858_v37 = vadd.f32 %v857_v34, %v856_v33  ;;  %v875_v40 = vadd.f32 %v873_v26, %v869_v35  ;;  %v900_v42 = vmul.f32 %v1989_v3, %v899_v23 }
  0xe4   : > { %v829_v41 = vrot.slane %v828_v32, 2  ;;  %v901_v44 = vmul.f32 %v1991_v4, %v899_v23  ;;  %v903_v45 = vstv %s2416_s24  ;;  %v880_v47 = vadd.f32 %v878_v28, %v874_v39  ;;  %s2532_s24 = sld [smem:[#allocation5 + $0xc01]] }
  0xe5   : > { %801 = vst.msk [vmem:[%s2377_s18 + $0x4] sm:$0xf] %vm799_vm8, %v1601_v36  ;;  %v859_v46 = vrot.slane %v858_v37, 4  ;;  %v881_v48 = vadd.f32 %v879_v29, %v875_v40  ;;  %v904_v49 = vmul.f32 %v1995_v5, %v903_v45  ;;  %v905_v51 = vmul.f32 %v1997_v6, %v903_v45 }
  0xe6   : > { %v909_v53 = vstv %s2422_s21  ;;  %v884_v55 = vadd.f32 %v883_v22, %v880_v47  ;;  %v2451_v58 = vadd.f32 %v829_v41, %v828_v32  ;;  %v915_v52 = vstv %s2432_s20  ;;  %s2534_s21 = sld [smem:[#allocation5 + $0xc02]]  ;;  %s2544_s20 = sld [smem:[#allocation6 + $0x18]] }
  0xe7   : > { %v860_v54 = vadd.f32 %v859_v46, %v858_v37  ;;  %v885_v56 = vadd.f32 %v883_v22, %v881_v48  ;;  %v906_v57 = vadd.f32 %v904_v49, %v900_v42  ;;  %v907_v60 = vadd.f32 %v905_v51, %v901_v44 }
  0xe8   : > { %v910_v61 = vmul.f32 %v1999_v7, %v909_v53  ;;  %v911_v62 = vmul.f32 %v2001_v8, %v909_v53  ;;  %v886_v63 = vmax.f32 %v884_v55, 0.0  ;;  %v931_v10 = vstv %s2434_s26  ;;  %s2546_s26 = sld [smem:[#allocation5 + $0xc80]] }
  0xe9   : > { %v887_v0 = vmax.f32 %v885_v56, 0.0  ;;  %v861_v11 = vrot.slane %v860_v54, 2  ;;  %v932_v59 = vmul.f32 %v1989_v3, %v931_v10  ;;  %v831_v43 = vrot.slane %v2451_v58, 1 }
  0xea   : > { %v912_v2 = vadd.f32 %v910_v61, %v906_v57  ;;  %v913_v9 = vadd.f32 %v911_v62, %v907_v60  ;;  %v888_v30 = vsel %vm279_vm0, %v886_v63, 0.0  ;;  %v933_v18 = vmul.f32 %v1991_v4, %v931_v10 }
  0xeb   : > { %v889_v13 = vsel %vm279_vm0, %v887_v0, 0.0  ;;  %v935_v35 = vstv %s2445_s28  ;;  %v941_v17 = vstv %s2447_s19  ;;  %v862_v21 = vadd.f32 %v861_v11, %v860_v54  ;;  %s2551_s28 = sld [smem:[#allocation5 + $0xc81]]  ;;  %s2555_s19 = sld [smem:[#allocation5 + $0xc82]] }
  0xec   : > { %v890_v14 = vadd.f32 %v889_v13, %v888_v30  ;;  %v916_v15 = vadd.f32 %v915_v52, %v912_v2  ;;  %v917_v16 = vadd.f32 %v915_v52, %v913_v9  ;;  %v936_v50 = vmul.f32 %v1995_v5, %v935_v35 }
  0xed   : > { %v937_v22 = vmul.f32 %v1997_v6, %v935_v35  ;;  %v942_v23 = vmul.f32 %v1999_v7, %v941_v17  ;;  %v943_v38 = vmul.f32 %v2001_v8, %v941_v17  ;;  %v947_v29 = vstv %s2457_s29  ;;  %s2565_s29 = sld [smem:[#allocation6 + $0x19]] }
  0xee   : > { %v891_v19 = vrot.slane %v890_v14, 4  ;;  %v918_v20 = vmax.f32 %v916_v15, 0.0  ;;  %v919_v1 = vmax.f32 %v917_v16, 0.0  ;;  %v938_v27 = vadd.f32 %v936_v50, %v932_v59 }
  0xef   : > { %v939_v28 = vadd.f32 %v937_v22, %v933_v18  ;;  %v963_v31 = vstv %s2459_s6  ;;  %v967_v40 = vstv %s2461_s7  ;;  %v973_v41 = vstv %s2465_s9  ;;  %s2567_s6 = sld [smem:[#allocation5 + $0xd00]]  ;;  %s2577_s7 = sld [smem:[#allocation5 + $0xd01]] }
  0xf0   : > { %v892_v24 = vadd.f32 %v891_v19, %v890_v14  ;;  %v920_v25 = vsel %vm279_vm0, %v918_v20, 0.0  ;;  %v921_v12 = vsel %vm279_vm0, %v919_v1, 0.0  ;;  %v944_v33 = vadd.f32 %v942_v23, %v938_v27  ;;  %s2579_s9 = sld [smem:[#allocation5 + $0xd02]] }
  0xf1   : > { %v922_v26 = vadd.f32 %v921_v12, %v920_v25  ;;  %v964_v34 = vmul.f32 %v1989_v3, %v963_v31  ;;  %v965_v36 = vmul.f32 %v1991_v4, %v963_v31  ;;  %v945_v39 = vadd.f32 %v943_v38, %v939_v28 }
  0xf2   : > { %v893_v32 = vrot.slane %v892_v24, 2  ;;  %v863_v42 = vrot.slane %v862_v21, 1  ;;  %v948_v44 = vadd.f32 %v947_v29, %v944_v33  ;;  %v968_v45 = vmul.f32 %v1995_v5, %v967_v40 }
  0xf3   : > { %v923_v37 = vrot.slane %v922_v26, 4  ;;  %v969_v46 = vmul.f32 %v1997_v6, %v967_v40  ;;  %v949_v48 = vadd.f32 %v947_v29, %v945_v39  ;;  %v974_v49 = vmul.f32 %v1999_v7, %v973_v41 }
  0xf4   : > { %v975_v51 = vmul.f32 %v2001_v8, %v973_v41  ;;  %v950_v53 = vmax.f32 %v948_v44, 0.0  ;;  %v970_v54 = vadd.f32 %v968_v45, %v964_v34  ;;  %v2496_v56 = vadd.f32 %v893_v32, %v892_v24 }
  0xf5   : > { %v924_v47 = vadd.f32 %v923_v37, %v922_v26  ;;  %v971_v55 = vadd.f32 %v969_v46, %v965_v36  ;;  %v951_v57 = vmax.f32 %v949_v48, 0.0  ;;  %v979_v60 = vstv %s2476_s15  ;;  %s2589_s15 = sld [smem:[#allocation6 + $0x1a]] }
  0xf6   : > { %v995_v61 = vstv %s2478_s10  ;;  %v952_v62 = vsel %vm279_vm0, %v950_v53, 0.0  ;;  %v976_v63 = vadd.f32 %v974_v49, %v970_v54  ;;  %v832_v52 = vadd.f32 %v831_v43, %v2451_v58  ;;  %s2591_s10 = sld [smem:[#allocation5 + $0xd80]] }
  0xf7   : > { %v977_v0 = vadd.f32 %v975_v51, %v971_v55  ;;  %v864_v10 = vadd.f32 %v863_v42, %v862_v21  ;;  %v925_v2 = vrot.slane %v924_v47, 2  ;;  %v953_v9 = vsel %vm279_vm0, %v951_v57, 0.0 }
  0xf8   : > { %v954_v11 = vadd.f32 %v953_v9, %v952_v62  ;;  %v980_v30 = vadd.f32 %v979_v60, %v976_v63  ;;  %v996_v14 = vmul.f32 %v1989_v3, %v995_v61  ;;  %v895_v15 = vrot.slane %v2496_v56, 1 }
  0xf9   : > { %v981_v13 = vadd.f32 %v979_v60, %v977_v0  ;;  %v997_v16 = vmul.f32 %v1991_v4, %v995_v61  ;;  %v999_v59 = vstv %s2488_s11  ;;  %v1005_v18 = vstv %s2490_s12  ;;  %s2596_s11 = sld [smem:[#allocation5 + $0xd81]]  ;;  %s2601_s12 = sld [smem:[#allocation5 + $0xd82]] }
  0xfa   : > { %v955_v58 = vrot.slane %v954_v11, 4  ;;  %v982_v43 = vmax.f32 %v980_v30, 0.0  ;;  %v1000_v17 = vmul.f32 %v1995_v5, %v999_v59  ;;  %v926_v19 = vadd.f32 %v925_v2, %v924_v47 }
  0xfb   : > { %v983_v35 = vmax.f32 %v981_v13, 0.0  ;;  %v1001_v20 = vmul.f32 %v1997_v6, %v999_v59  ;;  %v1006_v1 = vmul.f32 %v1999_v7, %v1005_v18  ;;  %v1007_v50 = vmul.f32 %v2001_v8, %v1005_v18 }
  0xfc   : > { %v956_v21 = vadd.f32 %v955_v58, %v954_v11  ;;  %v984_v22 = vsel %vm279_vm0, %v982_v43, 0.0  ;;  %v1002_v38 = vadd.f32 %v1000_v17, %v996_v14  ;;  %v1011_v12 = vstv %s2500_s23  ;;  %s2615_s23 = sld [smem:[#allocation6 + $0x1b]] }
  0xfd   : > { %v985_v23 = vsel %vm279_vm0, %v983_v35, 0.0  ;;  %v1003_v25 = vadd.f32 %v1001_v20, %v997_v16  ;;  %v1027_v27 = vstv %s2502_s25  ;;  %v1031_v34 = vstv %s2507_s27  ;;  %s2617_s25 = sld [smem:[#allocation5 + $0xe00]]  ;;  %s2627_s27 = sld [smem:[#allocation5 + $0xe01]] }
  0xfe   : > { %v986_v24 = vadd.f32 %v985_v23, %v984_v22  ;;  %v957_v26 = vrot.slane %v956_v21, 2  ;;  %v1008_v28 = vadd.f32 %v1006_v1, %v1002_v38  ;;  %v1028_v29 = vmul.f32 %v1989_v3, %v1027_v27 }
  0xff   : > { %v1029_v31 = vmul.f32 %v1991_v4, %v1027_v27  ;;  %v1009_v33 = vadd.f32 %v1007_v50, %v1003_v25  ;;  %v1037_v36 = vstv %s2509_s30  ;;  %v1032_v40 = vmul.f32 %v1995_v5, %v1031_v34  ;;  %s2629_s30 = sld [smem:[#allocation5 + $0xe02]] }
 0x100   : > { %v987_v32 = vrot.slane %v986_v24, 4  ;;  %v958_v37 = vadd.f32 %v957_v26, %v956_v21  ;;  %v1012_v39 = vadd.f32 %v1011_v12, %v1008_v28  ;;  %v1033_v41 = vmul.f32 %v1997_v6, %v1031_v34 }
 0x101   : > { %v1013_v44 = vadd.f32 %v1011_v12, %v1009_v33  ;;  %v1038_v45 = vmul.f32 %v1999_v7, %v1037_v36  ;;  %v1039_v46 = vmul.f32 %v2001_v8, %v1037_v36  ;;  %v2540_v47 = vmul.f32 0.0625, %v832_v52 }
 0x102   : > { %v988_v42 = vadd.f32 %v987_v32, %v986_v24  ;;  %v1014_v48 = vmax.f32 %v1012_v39, 0.0  ;;  %v1034_v49 = vadd.f32 %v1032_v40, %v1028_v29  ;;  %v1035_v51 = vadd.f32 %v1033_v41, %v1029_v31 }
 0x103   : > { %v927_v53 = vrot.slane %v926_v19, 1  ;;  %v1015_v54 = vmax.f32 %v1013_v44, 0.0  ;;  %v1043_v55 = vstv %s2520_s4  ;;  %v1059_v57 = vstv %s2522_s5  ;;  %s2637_s4 = sld [smem:[#allocation6 + $0x1c]]  ;;  %s2639_s5 = sld [smem:[#allocation5 + $0xe80]] }
 0x104   : > { %v2548_v60 = vmul.f32 0.0625, %v864_v10  ;;  %v1016_v61 = vsel %vm279_vm0, %v1014_v48, 0.0  ;;  %v1040_v62 = vadd.f32 %v1038_v45, %v1034_v49  ;;  %v1041_v63 = vadd.f32 %v1039_v46, %v1035_v51 }
 0x105   : > { %v896_v0 = vadd.f32 %v895_v15, %v2496_v56  ;;  %v959_v52 = vrot.slane %v958_v37, 1  ;;  %v989_v2 = vrot.slane %v988_v42, 2  ;;  %v1017_v9 = vsel %vm279_vm0, %v1015_v54, 0.0 }
 0x106   : > { %v1018_v11 = vadd.f32 %v1017_v9, %v1016_v61  ;;  %v1044_v30 = vadd.f32 %v1043_v55, %v1040_v62  ;;  %v1045_v10 = vadd.f32 %v1043_v55, %v1041_v63  ;;  %v1060_v13 = vmul.f32 %v1989_v3, %v1059_v57 }
 0x107   : > { %v928_v14 = vadd.f32 %v927_v53, %v926_v19  ;;  %v1061_v16 = vmul.f32 %v1991_v4, %v1059_v57  ;;  %v1063_v59 = vstv %s2532_s24  ;;  %v1069_v18 = vstv %s2534_s21  ;;  %s2644_s24 = sld [smem:[#allocation5 + $0xe81]]  ;;  %s2651_s21 = sld [smem:[#allocation5 + $0xe82]] }
 0x108   : > { %v1019_v58 = vrot.slane %v1018_v11, 4  ;;  %v1046_v43 = vmax.f32 %v1044_v30, 0.0  ;;  %v1047_v56 = vmax.f32 %v1045_v10, 0.0  ;;  %v1064_v15 = vmul.f32 %v1995_v5, %v1063_v59 }
 0x109   : > { %v960_v35 = vadd.f32 %v959_v52, %v958_v37  ;;  %v1065_v17 = vmul.f32 %v1997_v6, %v1063_v59  ;;  %v1070_v20 = vmul.f32 %v1999_v7, %v1069_v18  ;;  %v1071_v1 = vmul.f32 %v2001_v8, %v1069_v18 }
 0x10a   : > { %v990_v19 = vadd.f32 %v989_v2, %v988_v42  ;;  %v1048_v50 = vsel %vm279_vm0, %v1046_v43, 0.0  ;;  %v1049_v21 = vsel %vm279_vm0, %v1047_v56, 0.0  ;;  %v1066_v22 = vadd.f32 %v1064_v15, %v1060_v13 }
 0x10b   : > { %v1050_v23 = vadd.f32 %v1049_v21, %v1048_v50  ;;  %v1067_v38 = vadd.f32 %v1065_v17, %v1061_v16  ;;  %v1075_v24 = vstv %s2544_s20  ;;  %v1091_v25 = vstv %s2546_s26  ;;  %s2662_s20 = sld [smem:[#allocation6 + $0x1d]]  ;;  %s2664_s26 = sld [smem:[#allocation5 + $0xf00]] }
 0x10c   : > { %v1020_v12 = vadd.f32 %v1019_v58, %v1018_v11  ;;  %v1072_v27 = vadd.f32 %v1070_v20, %v1066_v22  ;;  %v1092_v26 = vmul.f32 %v1989_v3, %v1091_v25  ;;  %v1093_v28 = vmul.f32 %v1991_v4, %v1091_v25 }
 0x10d   : > { %v1051_v29 = vrot.slane %v1050_v23, 4  ;;  %v1073_v31 = vadd.f32 %v1071_v1, %v1067_v38  ;;  %v1095_v32 = vstv %s2551_s28  ;;  %v1101_v33 = vstv %s2555_s19  ;;  %s2674_s28 = sld [smem:[#allocation5 + $0xf01]]  ;;  %s2676_s19 = sld [smem:[#allocation5 + $0xf02]] }
 0x10e   : > { %v991_v34 = vrot.slane %v990_v19, 1  ;;  %v1076_v36 = vadd.f32 %v1075_v24, %v1072_v27  ;;  %v1096_v37 = vmul.f32 %v1995_v5, %v1095_v32  ;;  %v1097_v39 = vmul.f32 %v1997_v6, %v1095_v32 }
 0x10f   : > { %v1052_v40 = vadd.f32 %v1051_v29, %v1050_v23  ;;  %v1077_v41 = vadd.f32 %v1075_v24, %v1073_v31  ;;  %v1102_v42 = vmul.f32 %v1999_v7, %v1101_v33  ;;  %v1103_v44 = vmul.f32 %v2001_v8, %v1101_v33 }
 0x110   : > { %v2585_v45 = vmul.f32 0.0625, %v896_v0  ;;  %v1078_v46 = vmax.f32 %v1076_v36, 0.0  ;;  %v1098_v48 = vadd.f32 %v1096_v37, %v1092_v26  ;;  %v1099_v49 = vadd.f32 %v1097_v39, %v1093_v28 }
 0x111   : > { %v1021_v51 = vrot.slane %v1020_v12, 2  ;;  %v1079_v53 = vmax.f32 %v1077_v41, 0.0  ;;  %v1107_v54 = vstv %s2565_s29  ;;  %v1123_v55 = vstv %s2567_s6  ;;  %s2687_s29 = sld [smem:[#allocation6 + $0x1e]]  ;;  %s2689_s6 = sld [smem:[#allocation5 + $0xf80]] }
 0x112   : > { %v2593_v57 = vmul.f32 0.0625, %v928_v14  ;;  %v1080_v61 = vsel %vm279_vm0, %v1078_v46, 0.0  ;;  %v1104_v62 = vadd.f32 %v1102_v42, %v1098_v48  ;;  %v1105_v63 = vadd.f32 %v1103_v44, %v1099_v49 }
 0x113   : > { %v2598_v0 = vmul.f32 0.0625, %v960_v35  ;;  %v992_v52 = vadd.f32 %v991_v34, %v990_v19  ;;  %v1053_v2 = vrot.slane %v1052_v40, 2  ;;  %v1081_v9 = vsel %vm279_vm0, %v1079_v53, 0.0 }
 0x114   : > { %v1082_v11 = vadd.f32 %v1081_v9, %v1080_v61  ;;  %v1108_v30 = vadd.f32 %v1107_v54, %v1104_v62  ;;  %v1109_v10 = vadd.f32 %v1107_v54, %v1105_v63  ;;  %v1124_v13 = vmul.f32 %v1989_v3, %v1123_v55 }
 0x115   : > { %v2604_v14 = vadd.f32 %v1021_v51, %v1020_v12  ;;  %v1125_v16 = vmul.f32 %v1991_v4, %v1123_v55  ;;  %v1127_v59 = vstv %s2577_s7  ;;  %v1133_v18 = vstv %s2579_s9  ;;  %s2695_s7 = sld [smem:[#allocation5 + $0xf81]]  ;;  %s2701_s9 = sld [smem:[#allocation5 + $0xf82]] }
 0x116   : > { %v1083_v58 = vrot.slane %v1082_v11, 4  ;;  %v1110_v43 = vmax.f32 %v1108_v30, 0.0  ;;  %v1111_v56 = vmax.f32 %v1109_v10, 0.0  ;;  %v1128_v15 = vmul.f32 %v1995_v5, %v1127_v59 }
 0x117   : > { %v2610_v35 = vadd.f32 %v1053_v2, %v1052_v40  ;;  %v1129_v17 = vmul.f32 %v1997_v6, %v1127_v59  ;;  %v1134_v20 = vmul.f32 %v1999_v7, %v1133_v18  ;;  %v1135_v1 = vmul.f32 %v2001_v8, %v1133_v18 }
 0x118   : > { %v1084_v19 = vadd.f32 %v1083_v58, %v1082_v11  ;;  %v1112_v50 = vsel %vm279_vm0, %v1110_v43, 0.0  ;;  %v1113_v21 = vsel %vm279_vm0, %v1111_v56, 0.0  ;;  %v1130_v22 = vadd.f32 %v1128_v15, %v1124_v13 }
 0x119   : > { %v1114_v23 = vadd.f32 %v1113_v21, %v1112_v50  ;;  %v1131_v38 = vadd.f32 %v1129_v17, %v1125_v16  ;;  %v1139_v24 = vstv %s2589_s15  ;;  %v1155_v25 = vstv %s2591_s10  ;;  %s2711_s15 = sld [smem:[#allocation6 + $0x1f]] }
 0x11a   : > { %v1085_v12 = vrot.slane %v1084_v19, 2  ;;  %v1136_v27 = vadd.f32 %v1134_v20, %v1130_v22  ;;  %v1156_v26 = vmul.f32 %v1989_v3, %v1155_v25  ;;  %v1157_v28 = vmul.f32 %v1991_v4, %v1155_v25 }
 0x11b   : > { %v1115_v29 = vrot.slane %v1114_v23, 4  ;;  %v1137_v31 = vadd.f32 %v1135_v1, %v1131_v38  ;;  %v1159_v32 = vstv %s2596_s11  ;;  %v1165_v33 = vstv %s2601_s12 }
 0x11c   : > { %v1086_v34 = vadd.f32 %v1085_v12, %v1084_v19  ;;  %v1140_v36 = vadd.f32 %v1139_v24, %v1136_v27  ;;  %v1160_v37 = vmul.f32 %v1995_v5, %v1159_v32  ;;  %v1161_v39 = vmul.f32 %v1997_v6, %v1159_v32 }
 0x11d   : > { %v1116_v40 = vadd.f32 %v1115_v29, %v1114_v23  ;;  %v1141_v41 = vadd.f32 %v1139_v24, %v1137_v31  ;;  %v1166_v42 = vmul.f32 %v1999_v7, %v1165_v33  ;;  %v1167_v44 = vmul.f32 %v2001_v8, %v1165_v33 }
 0x11e   : > { %v1087_v46 = vrot.slane %v1086_v34, 1  ;;  %v1142_v48 = vmax.f32 %v1140_v36, 0.0  ;;  %v1162_v49 = vadd.f32 %v1160_v37, %v1156_v26  ;;  %v1163_v51 = vadd.f32 %v1161_v39, %v1157_v28 }
 0x11f   : > { %v1117_v53 = vrot.slane %v1116_v40, 2  ;;  %v1143_v54 = vmax.f32 %v1141_v41, 0.0  ;;  %v1171_v55 = vstv %s2615_s23  ;;  %v1187_v61 = vstv %s2617_s25 }
 0x120   : > { %v2641_v62 = vmul.f32 0.0625, %v992_v52  ;;  %v1144_v63 = vsel %vm279_vm0, %v1142_v48, 0.0  ;;  %v1168_v2 = vadd.f32 %v1166_v42, %v1162_v49  ;;  %v1169_v9 = vadd.f32 %v1167_v44, %v1163_v51 }
 0x121   : > { %v1023_v11 = vrot.slane %v2604_v14, 1  ;;  %v1055_v30 = vrot.slane %v2610_v35, 1  ;;  %v2648_v10 = vadd.f32 %v1117_v53, %v1116_v40  ;;  %v1145_v13 = vsel %vm279_vm0, %v1143_v54, 0.0 }
 0x122   : > { %v1146_v52 = vadd.f32 %v1145_v13, %v1144_v63  ;;  %v1172_v16 = vadd.f32 %v1171_v55, %v1168_v2  ;;  %v1173_v59 = vadd.f32 %v1171_v55, %v1169_v9  ;;  %v1188_v18 = vmul.f32 %v1989_v3, %v1187_v61 }
 0x123   : > { %v1088_v58 = vadd.f32 %v1087_v46, %v1086_v34  ;;  %v1189_v43 = vmul.f32 %v1991_v4, %v1187_v61  ;;  %v1191_v56 = vstv %s2627_s27  ;;  %v1197_v15 = vstv %s2629_s30 }
 0x124   : > { %v1147_v17 = vrot.slane %v1146_v52, 4  ;;  %v1174_v20 = vmax.f32 %v1172_v16, 0.0  ;;  %v1175_v1 = vmax.f32 %v1173_v59, 0.0  ;;  %v1192_v19 = vmul.f32 %v1995_v5, %v1191_v56 }
 0x125   : > { %v1119_v50 = vrot.slane %v2648_v10, 1  ;;  %v1193_v21 = vmul.f32 %v1997_v6, %v1191_v56  ;;  %v1198_v22 = vmul.f32 %v1999_v7, %v1197_v15  ;;  %v1199_v23 = vmul.f32 %v2001_v8, %v1197_v15 }
 0x126   : > { %v1148_v38 = vadd.f32 %v1147_v17, %v1146_v52  ;;  %v1176_v24 = vsel %vm279_vm0, %v1174_v20, 0.0  ;;  %v1177_v25 = vsel %vm279_vm0, %v1175_v1, 0.0  ;;  %v1194_v12 = vadd.f32 %v1192_v19, %v1188_v18 }
 0x127   : > { %v1178_v27 = vadd.f32 %v1177_v25, %v1176_v24  ;;  %v1195_v26 = vadd.f32 %v1193_v21, %v1189_v43  ;;  %v1203_v28 = vstv %s2637_s4  ;;  %v1219_v29 = vstv %s2639_s5 }
 0x128   : > { %v1149_v31 = vrot.slane %v1148_v38, 2  ;;  %v1200_v32 = vadd.f32 %v1198_v22, %v1194_v12  ;;  %v1220_v33 = vmul.f32 %v1989_v3, %v1219_v29  ;;  %v1221_v34 = vmul.f32 %v1991_v4, %v1219_v29 }
 0x129   : > { %v1179_v36 = vrot.slane %v1178_v27, 4  ;;  %v1201_v37 = vadd.f32 %v1199_v23, %v1195_v26  ;;  %v1223_v39 = vstv %s2644_s24  ;;  %v1229_v40 = vstv %s2651_s21 }
 0x12a   : > { %v1150_v41 = vadd.f32 %v1149_v31, %v1148_v38  ;;  %v1204_v42 = vadd.f32 %v1203_v28, %v1200_v32  ;;  %v1224_v44 = vmul.f32 %v1995_v5, %v1223_v39  ;;  %v1225_v46 = vmul.f32 %v1997_v6, %v1223_v39 }
 0x12b   : > { %v1180_v48 = vadd.f32 %v1179_v36, %v1178_v27  ;;  %v1205_v49 = vadd.f32 %v1203_v28, %v1201_v37  ;;  %v1230_v51 = vmul.f32 %v1999_v7, %v1229_v40  ;;  %v1231_v53 = vmul.f32 %v2001_v8, %v1229_v40 }
 0x12c   : > { %v2683_v54 = vadd.f32 %v1023_v11, %v2604_v14  ;;  %v1206_v55 = vmax.f32 %v1204_v42, 0.0  ;;  %v1226_v61 = vadd.f32 %v1224_v44, %v1220_v33  ;;  %v1227_v63 = vadd.f32 %v1225_v46, %v1221_v34 }
 0x12d   : > { %v1151_v2 = vrot.slane %v1150_v41, 1  ;;  %v1207_v9 = vmax.f32 %v1205_v49, 0.0  ;;  %v1235_v13 = vstv %s2662_s20  ;;  %v1251_v52 = vstv %s2664_s26 }
 0x12e   : > { %v2692_v16 = vadd.f32 %v1055_v30, %v2610_v35  ;;  %v1208_v59 = vsel %vm279_vm0, %v1206_v55, 0.0  ;;  %v1232_v14 = vadd.f32 %v1230_v51, %v1226_v61  ;;  %v1233_v11 = vadd.f32 %v1231_v53, %v1227_v63 }
 0x12f   : > { %v2697_v18 = vmul.f32 0.0625, %v1088_v58  ;;  %v1120_v43 = vadd.f32 %v1119_v50, %v2648_v10  ;;  %v1181_v56 = vrot.slane %v1180_v48, 2  ;;  %v1209_v15 = vsel %vm279_vm0, %v1207_v9, 0.0 }
 0x130   : > { %v1210_v17 = vadd.f32 %v1209_v15, %v1208_v59  ;;  %v1236_v35 = vadd.f32 %v1235_v13, %v1232_v14  ;;  %v1237_v30 = vadd.f32 %v1235_v13, %v1233_v11  ;;  %v1252_v20 = vmul.f32 %v1989_v3, %v1251_v52 }
 0x131   : > { %v1152_v1 = vadd.f32 %v1151_v2, %v1150_v41  ;;  %v1253_v19 = vmul.f32 %v1991_v4, %v1251_v52  ;;  %v1255_v21 = vstv %s2674_s28  ;;  %v1261_v22 = vstv %s2676_s19 }
 0x132   : > { %v1211_v58 = vrot.slane %v1210_v17, 4  ;;  %v1238_v23 = vmax.f32 %v1236_v35, 0.0  ;;  %v1239_v10 = vmax.f32 %v1237_v30, 0.0  ;;  %v1256_v50 = vmul.f32 %v1995_v5, %v1255_v21 }
 0x133   : > { %v1182_v38 = vadd.f32 %v1181_v56, %v1180_v48  ;;  %v1257_v24 = vmul.f32 %v1997_v6, %v1255_v21  ;;  %v1262_v25 = vmul.f32 %v1999_v7, %v1261_v22  ;;  %v1263_v12 = vmul.f32 %v2001_v8, %v1261_v22 }
 0x134   : > { %v1212_v27 = vadd.f32 %v1211_v58, %v1210_v17  ;;  %v1240_v26 = vsel %vm279_vm0, %v1238_v23, 0.0  ;;  %v1241_v28 = vsel %vm279_vm0, %v1239_v10, 0.0  ;;  %v1258_v29 = vadd.f32 %v1256_v50, %v1252_v20 }
 0x135   : > { %v1242_v31 = vadd.f32 %v1241_v28, %v1240_v26  ;;  %v1259_v32 = vadd.f32 %v1257_v24, %v1253_v19  ;;  %v1267_v33 = vstv %s2687_s29  ;;  %v1283_v34 = vstv %s2689_s6 }
 0x136   : > { %v1213_v36 = vrot.slane %v1212_v27, 2  ;;  %v1264_v37 = vadd.f32 %v1262_v25, %v1258_v29  ;;  %v1284_v39 = vmul.f32 %v1989_v3, %v1283_v34  ;;  %v1285_v40 = vmul.f32 %v1991_v4, %v1283_v34 }
 0x137   : > { %v1243_v41 = vrot.slane %v1242_v31, 4  ;;  %v1265_v42 = vadd.f32 %v1263_v12, %v1259_v32  ;;  %v1287_v44 = vstv %s2695_s7  ;;  %v1293_v46 = vstv %s2701_s9 }
 0x138   : > { %v1214_v48 = vadd.f32 %v1213_v36, %v1212_v27  ;;  %v1268_v49 = vadd.f32 %v1267_v33, %v1264_v37  ;;  %v1288_v51 = vmul.f32 %v1995_v5, %v1287_v44  ;;  %v1289_v53 = vmul.f32 %v1997_v6, %v1287_v44 }
 0x139   : > { %v1244_v55 = vadd.f32 %v1243_v41, %v1242_v31  ;;  %v1269_v61 = vadd.f32 %v1267_v33, %v1265_v42  ;;  %v1294_v63 = vmul.f32 %v1999_v7, %v1293_v46  ;;  %v1295_v2 = vmul.f32 %v2001_v8, %v1293_v46 }
 0x13a   : > { %v1183_v3 = vrot.slane %v1182_v38, 1  ;;  %v1270_v9 = vmax.f32 %v1268_v49, 0.0  ;;  %v1290_v4 = vadd.f32 %v1288_v51, %v1284_v39  ;;  %v1291_v13 = vadd.f32 %v1289_v53, %v1285_v40 }
 0x13b   : > { %v1245_v52 = vrot.slane %v1244_v55, 2  ;;  %v1271_v59 = vmax.f32 %v1269_v61, 0.0  ;;  %v1299_v14 = vstv %s2711_s15  ;;  %v1314_v11 = vsel %vm770_vm1, %v2540_v47, %v2548_v60 }
 0x13c   : > { %v1121_v5 = vmul.f32 0.0625, %v1120_v43  ;;  %v1272_v6 = vsel %vm279_vm0, %v1270_v9, 0.0  ;;  %v1296_v56 = vadd.f32 %v1294_v63, %v1290_v4  ;;  %v1297_v15 = vadd.f32 %v1295_v2, %v1291_v13 }
 0x13d   : > { %v1215_v17 = vrot.slane %v1214_v48, 1  ;;  %v1246_v7 = vadd.f32 %v1245_v52, %v1244_v55  ;;  %v1273_v8 = vsel %vm279_vm0, %v1271_v59, 0.0  ;;  %v1315_v35 = vsel %vm772_vm2, %v1314_v11, %v2585_v45 }
 0x13e   : > { %v1025_v30 = vmul.f32 0.0625, %v2683_v54  ;;  %v1274_v20 = vadd.f32 %v1273_v8, %v1272_v6  ;;  %v1300_v19 = vadd.f32 %v1299_v14, %v1296_v56  ;;  %v1301_v21 = vadd.f32 %v1299_v14, %v1297_v15 }
 0x13f   : > { %v1057_v22 = vmul.f32 0.0625, %v2692_v16  ;;  %v1153_v47 = vmul.f32 0.0625, %v1152_v1  ;;  %v1184_v60 = vadd.f32 %v1183_v3, %v1182_v38  ;;  %v1316_v43 = vsel %vm774_vm3, %v1315_v35, %v2593_v57 }
 0x140   : > { %v1275_v58 = vrot.slane %v1274_v20, 4  ;;  %v1302_v23 = vmax.f32 %v1300_v19, 0.0  ;;  %v1303_v10 = vmax.f32 %v1301_v21, 0.0  ;;  %v1317_v50 = vsel %vm776_vm4, %v1316_v43, %v2598_v0 }
 0x141   : > { %v1216_v24 = vadd.f32 %v1215_v17, %v1214_v48  ;;  %v1247_v45 = vrot.slane %v1246_v7, 1  ;;  %v1318_v54 = vsel %vm778_vm5, %v1317_v50, %v2641_v62  ;;  %v1321_v16 = vsel %vm770_vm1, %v2697_v18, %v1121_v5 }
 0x142   : > { %v1276_v1 = vadd.f32 %v1275_v58, %v1274_v20  ;;  %v1304_v38 = vsel %vm279_vm0, %v1302_v23, 0.0  ;;  %v1305_v57 = vsel %vm279_vm0, %v1303_v10, 0.0  ;;  %v1319_v25 = vsel %vm780_vm6, %v1318_v54, %v1025_v30 }
 0x143   : > { %v1185_v12 = vmul.f32 0.0625, %v1184_v60  ;;  %v1306_v27 = vadd.f32 %v1305_v57, %v1304_v38  ;;  %v1320_v0 = vsel %vm782_vm7, %v1319_v25, %v1057_v22  ;;  %v1322_v28 = vsel %vm772_vm2, %v1321_v16, %v1153_v47 }
 0x144   : > { %v1277_v26 = vrot.slane %v1276_v1, 2  ;;  %v1602_v29 = vpack.c.bf16 %v1320_v0, %v1320_v0  ;;  %v1248_v62 = vadd.f32 %v1247_v45, %v1246_v7  ;;  %v1217_v32 = vmul.f32 0.0625, %v1216_v24 }
 0x145   : > { %v1307_v31 = vrot.slane %v1306_v27, 4  ;;  %v1323_v34 = vsel %vm774_vm3, %v1322_v28, %v1185_v12 }
 0x146   : > { %v1278_v33 = vadd.f32 %v1277_v26, %v1276_v1  ;;  %1336 = vst.msk [vmem:[%s2377_s18 + $0x8] sm:$0xf] %vm799_vm8, %v1602_v29  ;;  %v1249_v37 = vmul.f32 0.0625, %v1248_v62  ;;  %v1324_v41 = vsel %vm776_vm4, %v1323_v34, %v1217_v32 }
 0x147   : > { %v1308_v18 = vadd.f32 %v1307_v31, %v1306_v27 }
 0x148   : > { %v1279_v36 = vrot.slane %v1278_v33, 1  ;;  %v1325_v48 = vsel %vm778_vm5, %v1324_v41, %v1249_v37 }
 0x149   : > { %v1309_v39 = vrot.slane %v1308_v18, 2 }
 0x14a   : > { %v1280_v40 = vadd.f32 %v1279_v36, %v1278_v33 }
 0x14b   : > { %v1310_v42 = vadd.f32 %v1309_v39, %v1308_v18 }
 0x14c   : > { %v1281_v44 = vmul.f32 0.0625, %v1280_v40 }
 0x14d   : > { %v1311_v46 = vrot.slane %v1310_v42, 1 }
 0x14e   : > { %v1326_v51 = vsel %vm780_vm6, %v1325_v48, %v1281_v44 }
 0x14f   : > { %v1312_v49 = vadd.f32 %v1311_v46, %v1310_v42 }
 0x151   : > { %v1313_v53 = vmul.f32 0.0625, %v1312_v49 }
 0x153   : > { %v1327_v55 = vsel %vm782_vm7, %v1326_v51, %v1313_v53 }
 0x154   : > { %v1603_v61 = vpack.c.bf16 %v1327_v55, %v1327_v55 }
 0x156   : > { %1337 = vst.msk [vmem:[%s2377_s18 + $0xc] sm:$0xf] %vm799_vm8, %v1603_v61 }
 0x157 PF: > { %s18_s17 = sadd.s32 1, %s1819_s17   ;;  %s2791_s12 = smov %s1803_s13 }
 0x158   : > { %p15_p9 = scmp.ge.s32.totalorder %s18_s17, 4   ;;  %s2792_s13 = smov %s1807_s14 }
 0x159   : > { %s2793_s14 = smov %s1937_s22  ;;  %s2794_s15 = smov %s1815_s16 }
 0x15a   : > { %s2795_s16 = smov %s2797_s8  ;;  %17 = sbr.rel (!%p15_p9) target bundleno = 6 (0x6), region = 83 }
 0x161   :  { %1365 = vsyncpa [#allocation3], 1 }
 0x162   :  { %1367 = vsyncpa [#allocation3 + $0x1], 1 }
 0x163   :  { %1368 = vsyncpa [#allocation4], 1 }
 0x164   :  { %1370 = vsyncpa [#allocation4 + $0x1], 1 }
 0x165   :  { %1371 = vsyncpa [#allocation7], 1 }

</bundles_post_ra>
